<compile_context>
chip_gen: v6e
topology: v6e:2x2x1
jax: 0.10.0
libtpu: 0.0.40
codegen_flags: <defaults>
</compile_context>

<pallas_src>
import functools

import jax
import jax.numpy as jnp
from jax.experimental import pallas as pl
from jax.experimental.pallas import tpu as pltpu

NEG_BIG = -9e15


def _pick_tile(n, target, align):
    """Largest tile <= target that divides n and is a multiple of `align`;
    falls back to the full dimension (full-array blocks are always legal)."""
    if n <= target:
        return n
    t = (target // align) * align
    while t >= align:
        if n % t == 0:
            return t
        t -= align
    return n


def _elu(h):
    # clamp the exp argument so the discarded positive branch never overflows
    return jnp.where(h > 0, h, jnp.exp(jnp.minimum(h, 0.0)) - 1.0)


# --------------------------------------------------------------------------
# Kernel 1: nheads fused GAT attentions (online softmax over kv tiles), elu,
# concat-in-VMEM, + output-layer projection (wh_o, f_o) at finalize.
# --------------------------------------------------------------------------
def _heads_attn_kernel(f1_ref, f2t_ref, mask_ref, whk_ref, wout_ref, a12o_ref,
                       who_ref, fo_ref, m_ref, l_ref, acc_ref,
                       *, alpha, nheads, nhid):
    ki = pl.program_id(1)
    nk = pl.num_programs(1)

    @pl.when(ki == 0)
    def _():
        m_ref[...] = jnp.full_like(m_ref, -jnp.inf)
        l_ref[...] = jnp.zeros_like(l_ref)
        acc_ref[...] = jnp.zeros_like(acc_ref)

    # Additive adjacency bias for this (tq, tkv) tile: built once from the
    # int8 mask and reused by every head.
    adj_f = mask_ref[...].astype(jnp.float32)
    bias = jnp.where(adj_f > 0.0, 0.0, NEG_BIG)

    wh_kv = whk_ref[...]                                 # (tkv, nheads*nhid) bf16

    for h in range(nheads):                              # static loop, nheads small
        sl = slice(h * nhid, (h + 1) * nhid)
        s = f1_ref[:, h:h + 1] + f2t_ref[h:h + 1, :]     # (tq, tkv)
        s = jnp.maximum(s, alpha * s)                    # leaky_relu (0<alpha<1)
        s = s + bias

        m_prev = m_ref[:, h:h + 1]
        m_cur = jnp.maximum(m_prev, jnp.max(s, axis=1, keepdims=True))
        corr = jnp.exp(m_prev - m_cur)
        p = jnp.exp(s - m_cur)                           # (tq, tkv) f32
        l_ref[:, h:h + 1] = corr * l_ref[:, h:h + 1] + jnp.sum(p, axis=1,
                                                               keepdims=True)
        acc_ref[:, sl] = corr * acc_ref[:, sl] + jnp.dot(
            p.astype(jnp.bfloat16), wh_kv[:, sl],
            preferred_element_type=jnp.float32)
        m_ref[:, h:h + 1] = m_cur

    @pl.when(ki == nk - 1)
    def _():
        # normalise each head (exact division; O(tq*nheads*nhid), negligible)
        for h in range(nheads):
            sl = slice(h * nhid, (h + 1) * nhid)
            acc_ref[:, sl] = acc_ref[:, sl] / l_ref[:, h:h + 1]
        h_cat = _elu(acc_ref[...])                       # (tq, nheads*nhid)
        # output GAT-layer projection, fused so h_cat never leaves VMEM
        wh_o = jnp.dot(h_cat.astype(jnp.bfloat16), wout_ref[...],
                       preferred_element_type=jnp.float32)    # (tq, nclass)
        f_o = jnp.dot(wh_o, a12o_ref[...],
                      preferred_element_type=jnp.float32)     # (tq, 2)
        who_ref[...] = wh_o.astype(who_ref.dtype)
        fo_ref[...] = f_o


# --------------------------------------------------------------------------
# Kernel 2: output attention (flash-tiled online softmax) + elu + log_softmax.
# --------------------------------------------------------------------------
def _out_attn_kernel(f1_ref, f2t_ref, mask_ref, whv_ref, out_ref,
                     m_ref, l_ref, acc_ref, *, alpha):
    ki = pl.program_id(1)
    nk = pl.num_programs(1)

    @pl.when(ki == 0)
    def _():
        m_ref[...] = jnp.full_like(m_ref, -jnp.inf)
        l_ref[...] = jnp.zeros_like(l_ref)
        acc_ref[...] = jnp.zeros_like(acc_ref)

    adj_f = mask_ref[...].astype(jnp.float32)
    bias = jnp.where(adj_f > 0.0, 0.0, NEG_BIG)

    s = f1_ref[...] + f2t_ref[...]                       # (tq,1)+(1,tkv)->(tq,tkv)
    s = jnp.maximum(s, alpha * s)
    s = s + bias

    m_prev = m_ref[...]
    m_cur = jnp.maximum(m_prev, jnp.max(s, axis=1, keepdims=True))
    corr = jnp.exp(m_prev - m_cur)
    p = jnp.exp(s - m_cur)
    l_ref[...] = corr * l_ref[...] + jnp.sum(p, axis=1, keepdims=True)
    acc_ref[...] = corr * acc_ref[...] + jnp.dot(
        p.astype(jnp.bfloat16), whv_ref[...], preferred_element_type=jnp.float32)
    m_ref[...] = m_cur

    @pl.when(ki == nk - 1)
    def _():
        h = _elu(acc_ref[...] / l_ref[...])              # (tq, nclass)
        mx = jnp.max(h, axis=1, keepdims=True)
        z = h - mx
        lse = jnp.log(jnp.sum(jnp.exp(z), axis=1, keepdims=True))
        out_ref[...] = z - lse


# --------------------------------------------------------------------------
# Wrapper
# --------------------------------------------------------------------------
def rwr_process_forward(x, adj, params, *, alpha,
                        tq_target=128, tkv_target=512):
    """Pallas implementation of RWR_process.forward (inference)."""
    assert 0.0 < alpha < 1.0, "maximum-based leaky_relu requires 0 < alpha < 1"
    W_h, a1_h, a2_h = params["W_heads"], params["a1_heads"], params["a2_heads"]
    W_o, a1_o, a2_o = params["W_out"], params["a1_out"], params["a2_out"]

    nheads, nfeat, nhid = W_h.shape
    N = x.shape[0]
    nclass = W_o.shape[1]

    # ---- small O(N*nfeat*nheads*nhid) projections (not N^2); the N^2
    #      attention work below is fully in Pallas ---------------------------
    W_all = jnp.transpose(W_h, (1, 0, 2)).reshape(nfeat, nheads * nhid)
    wh_all = jnp.dot(x, W_all)                                 # (N, nheads*nhid)

    # block-diagonal attention-vector matrix -> all heads' f1/f2 in one matmul
    eye = jnp.eye(nheads, dtype=jnp.float32)
    A1 = (a1_h[..., 0][:, :, None] * eye[:, None, :]).reshape(nheads * nhid, nheads)
    A2 = (a2_h[..., 0][:, :, None] * eye[:, None, :]).reshape(nheads * nhid, nheads)
    f_all = jnp.dot(wh_all, jnp.concatenate([A1, A2], axis=1))  # (N, 2*nheads)
    f1_all = f_all[:, :nheads]                                  # (N, nheads)
    f2t_all = f_all[:, nheads:].T                               # (nheads, N), once

    mask_i8 = (adj > 0).astype(jnp.int8)          # 4x smaller HBM stream vs f32
    wh_bf16 = wh_all.astype(jnp.bfloat16)         # bf16 MXU value operand
    W_o_bf16 = W_o.astype(jnp.bfloat16)
    a12_out = jnp.concatenate([a1_o, a2_o], axis=1)             # (nclass, 2)

    tq = _pick_tile(N, tq_target, 32)     # 32: int8 mask sublane tiling
    tkv = _pick_tile(N, tkv_target, 128)  # 128: lane tiling
    nq, nk = N // tq, N // tkv

    cparams = pltpu.CompilerParams(
        dimension_semantics=("parallel", "arbitrary"))

    k1 = functools.partial(_heads_attn_kernel, alpha=alpha,
                           nheads=nheads, nhid=nhid)
    wh_o, f_o = pl.pallas_call(
        k1,
        out_shape=(jax.ShapeDtypeStruct((N, nclass), jnp.bfloat16),
                   jax.ShapeDtypeStruct((N, 2), jnp.float32)),
        grid_spec=pltpu.PrefetchScalarGridSpec(
            num_scalar_prefetch=0,
            grid=(nq, nk),
            in_specs=[
                pl.BlockSpec((tq, nheads), lambda qi, ki: (qi, 0)),       # f1
                pl.BlockSpec((nheads, tkv), lambda qi, ki: (0, ki)),      # f2^T
                pl.BlockSpec((tq, tkv), lambda qi, ki: (qi, ki),          # adj mask
                             pipeline_mode=pl.Buffered(2)),
                pl.BlockSpec((tkv, nheads * nhid), lambda qi, ki: (ki, 0)),  # wh (values)
                pl.BlockSpec((nheads * nhid, nclass), lambda qi, ki: (0, 0)),  # W_out
                pl.BlockSpec((nclass, 2), lambda qi, ki: (0, 0)),            # [a1_o|a2_o]
            ],
            out_specs=(
                pl.BlockSpec((tq, nclass), lambda qi, ki: (qi, 0)),       # wh_o
                pl.BlockSpec((tq, 2), lambda qi, ki: (qi, 0)),            # f_o
            ),
            scratch_shapes=[
                pltpu.VMEM((tq, nheads), jnp.float32),          # running max
                pltpu.VMEM((tq, nheads), jnp.float32),          # running sum
                pltpu.VMEM((tq, nheads * nhid), jnp.float32),   # acc (concat)
            ]),
        compiler_params=cparams,
    )(f1_all, f2t_all, mask_i8, wh_bf16, W_o_bf16, a12_out)

    f1_o = f_o[:, 0:1]                                          # (N, 1)
    f2t_o = f_o[:, 1:2].T                                       # (1, N), once

    k2 = functools.partial(_out_attn_kernel, alpha=alpha)
    out = pl.pallas_call(
        k2,
        out_shape=jax.ShapeDtypeStruct((N, nclass), jnp.float32),
        grid_spec=pltpu.PrefetchScalarGridSpec(
            num_scalar_prefetch=0,
            grid=(nq, nk),
            in_specs=[
                pl.BlockSpec((tq, 1), lambda qi, ki: (qi, 0)),            # f1_o
                pl.BlockSpec((1, tkv), lambda qi, ki: (0, ki)),           # f2_o^T
                pl.BlockSpec((tq, tkv), lambda qi, ki: (qi, ki),          # adj mask
                             pipeline_mode=pl.Buffered(2)),
                pl.BlockSpec((tkv, nclass), lambda qi, ki: (ki, 0)),      # wh_o (values)
            ],
            out_specs=pl.BlockSpec((tq, nclass), lambda qi, ki: (qi, 0)),
            scratch_shapes=[
                pltpu.VMEM((tq, 1), jnp.float32),
                pltpu.VMEM((tq, 1), jnp.float32),
                pltpu.VMEM((tq, nclass), jnp.float32),
            ]),
        compiler_params=cparams,
    )(f1_o, f2t_o, mask_i8, wh_o)
    return out


# --------------------------------------------------------------------------
# Pure-JAX reference (f32 everywhere) for validation.
# --------------------------------------------------------------------------
def _reference_forward(x, adj, params, *, alpha):
    W_h, a1_h, a2_h = params["W_heads"], params["a1_heads"], params["a2_heads"]
    W_o, a1_o, a2_o = params["W_out"], params["a1_out"], params["a2_out"]
    nheads = W_h.shape[0]

    def gat_layer(h, W, a1, a2, apply_elu):
        Wh = h @ W
        f1 = Wh @ a1
        f2 = Wh @ a2
        e = f1 + f2.T
        e = jnp.where(e > 0, e, alpha * e)
        e = jnp.where(adj > 0, e, NEG_BIG)
        attn = jax.nn.softmax(e, axis=1)
        hp = attn @ Wh
        return jax.nn.elu(hp) if apply_elu else hp

    heads = [gat_layer(x, W_h[i], a1_h[i], a2_h[i], True) for i in range(nheads)]
    h_cat = jnp.concatenate(heads, axis=1)
    out = jax.nn.elu(gat_layer(h_cat, W_o, a1_o, a2_o, False))
    return jax.nn.log_softmax(out, axis=1)


def init_params(key, nfeat, nhid, nclass, nheads):
    ks = jax.random.split(key, 6)
    scale_w = 1.0 / jnp.sqrt(nfeat)
    scale_wo = 1.0 / jnp.sqrt(nhid * nheads)
    return {
        "W_heads": scale_w * jax.random.normal(ks[0], (nheads, nfeat, nhid), jnp.float32),
        "a1_heads": 0.1 * jax.random.normal(ks[1], (nheads, nhid, 1), jnp.float32),
        "a2_heads": 0.1 * jax.random.normal(ks[2], (nheads, nhid, 1), jnp.float32),
        "W_out": scale_wo * jax.random.normal(ks[3], (nheads * nhid, nclass), jnp.float32),
        "a1_out": 0.1 * jax.random.normal(ks[4], (nclass, 1), jnp.float32),
        "a2_out": 0.1 * jax.random.normal(ks[5], (nclass, 1), jnp.float32),
    }


if __name__ == "__main__":
    # Small, module-consistent shapes: N nodes with nfeat features each.
    N, nfeat, nhid, nclass, nheads = 32, 16, 8, 4, 4
    alpha = 0.2

    key = jax.random.PRNGKey(0)
    kx, kadj, kparams = jax.random.split(key, 3)

    x = jax.random.normal(kx, (N, nfeat), jnp.float32)

    # deterministic sparse-ish symmetric adjacency with self-loops
    r = jax.random.uniform(kadj, (N, N))
    adj = (r > 0.8).astype(jnp.float32)
    adj = jnp.maximum(adj, adj.T)
    adj = jnp.maximum(adj, jnp.eye(N, dtype=jnp.float32))

    params = init_params(kparams, nfeat, nhid, nclass, nheads)

    fwd = jax.jit(functools.partial(rwr_process_forward, alpha=alpha))
    out = jax.block_until_ready(fwd(x, adj, params))

    assert out.shape == (N, nclass)
    assert bool(jnp.all(jnp.isfinite(out)))
    # rows of log_softmax should exp-sum to ~1
    assert jnp.allclose(jnp.sum(jnp.exp(out), axis=1), 1.0, atol=1e-4)
    # match the pure-f32 JAX reference (loose tol: kernel uses bf16 MXU operands)
    ref = _reference_forward(x, adj, params, alpha=alpha)
    assert jnp.allclose(out, ref, atol=1e-1), float(jnp.max(jnp.abs(out - ref)))
    print("KERNEL_OK")
</pallas_src>

<mosaic_0001>
module attributes {stable_mosaic.version = 11 : i64} {
  func.func @_out_attn_kernel(%arg0: i32, %arg1: i32, %arg2: memref<32x1xf32, #tpu.memory_space<vmem>>, %arg3: memref<1x32xf32, #tpu.memory_space<vmem>>, %arg4: memref<32x32xi8, #tpu.memory_space<vmem>>, %arg5: memref<32x4xbf16, #tpu.memory_space<vmem>>, %arg6: memref<32x4xf32, #tpu.memory_space<vmem>>, %arg7: memref<32x1xf32, #tpu.memory_space<vmem>>, %arg8: memref<32x1xf32, #tpu.memory_space<vmem>>, %arg9: memref<32x4xf32, #tpu.memory_space<vmem>>) attributes {dimension_semantics = [#tpu.dimension_semantics<parallel>, #tpu.dimension_semantics<arbitrary>], iteration_bounds = array<i64: 1, 1>, scalar_prefetch = 0 : i64, scratch_operands = 3 : i64, tpu.core_type = #tpu.core_type<tc>, window_params = [{transform_indices = @transform_0, window_bounds = array<i64: 32, 1>}, {transform_indices = @transform_1, window_bounds = array<i64: 1, 32>}, {pipeline_mode = #tpu.pipeline_mode<double_buffered>, transform_indices = @transform_2, window_bounds = array<i64: 32, 32>}, {transform_indices = @transform_3, window_bounds = array<i64: 32, 4>}, {transform_indices = @transform_4, window_bounds = array<i64: 32, 4>}]} {
    %c0_i32 = arith.constant 0 : i32
    %0 = arith.cmpi eq, %arg1, %c0_i32 : i32
    %1 = arith.extui %0 : i1 to i32
    %c0_i32_0 = arith.constant 0 : i32
    %2 = arith.cmpi ne, %1, %c0_i32_0 : i32
    scf.if %2 {
      %cst_28 = arith.constant 0xFF800000 : f32
      %46 = vector.broadcast %cst_28 : f32 to vector<32x1xf32>
      %c0_29 = arith.constant 0 : index
      %c0_30 = arith.constant 0 : index
      %47 = vector.load %arg7[%c0_29, %c0_30] : memref<32x1xf32, #tpu.memory_space<vmem>>, vector<32x1xf32>
      tpu.vector_store %arg7[%c0_29, %c0_30], %46 {strides = array<i32>} : memref<32x1xf32, #tpu.memory_space<vmem>>, vector<32x1xf32>,
      %cst_31 = arith.constant 0.000000e+00 : f32
      %48 = vector.broadcast %cst_31 : f32 to vector<32x1xf32>
      %c0_32 = arith.constant 0 : index
      %c0_33 = arith.constant 0 : index
      %49 = vector.load %arg8[%c0_32, %c0_33] : memref<32x1xf32, #tpu.memory_space<vmem>>, vector<32x1xf32>
      tpu.vector_store %arg8[%c0_32, %c0_33], %48 {strides = array<i32>} : memref<32x1xf32, #tpu.memory_space<vmem>>, vector<32x1xf32>,
      %cst_34 = arith.constant 0.000000e+00 : f32
      %50 = vector.broadcast %cst_34 : f32 to vector<32x4xf32>
      %c0_35 = arith.constant 0 : index
      %c0_36 = arith.constant 0 : index
      %51 = vector.load %arg9[%c0_35, %c0_36] : memref<32x4xf32, #tpu.memory_space<vmem>>, vector<32x4xf32>
      tpu.vector_store %arg9[%c0_35, %c0_36], %50 {strides = array<i32>} : memref<32x4xf32, #tpu.memory_space<vmem>>, vector<32x4xf32>,
    } else {
    }
    %c0 = arith.constant 0 : index
    %c0_1 = arith.constant 0 : index
    %3 = vector.load %arg4[%c0, %c0_1] : memref<32x32xi8, #tpu.memory_space<vmem>>, vector<32x32xi8>
    %4 = arith.sitofp %3 : vector<32x32xi8> to vector<32x32xf32>
    %cst = arith.constant 0.000000e+00 : f32
    %5 = vector.broadcast %cst : f32 to vector<32x32xf32>
    %6 = arith.cmpf ogt, %4, %5 : vector<32x32xf32>
    %cst_2 = arith.constant 0.000000e+00 : f32
    %cst_3 = arith.constant -9.000000e+15 : f32
    %7 = vector.broadcast %cst_2 : f32 to vector<32x32xf32>
    %8 = vector.broadcast %cst_3 : f32 to vector<32x32xf32>
    %9 = arith.select %6, %7, %8 : vector<32x32xi1>, vector<32x32xf32>
    %c0_4 = arith.constant 0 : index
    %c0_5 = arith.constant 0 : index
    %10 = vector.load %arg2[%c0_4, %c0_5] : memref<32x1xf32, #tpu.memory_space<vmem>>, vector<32x1xf32>
    %c0_6 = arith.constant 0 : index
    %c0_7 = arith.constant 0 : index
    %11 = vector.load %arg3[%c0_6, %c0_7] : memref<1x32xf32, #tpu.memory_space<vmem>>, vector<1x32xf32>
    %12 = vector.broadcast %10 : vector<32x1xf32> to vector<32x32xf32>
    %13 = vector.broadcast %11 : vector<1x32xf32> to vector<32x32xf32>
    %14 = arith.addf %12, %13 : vector<32x32xf32>
    %cst_8 = arith.constant 2.000000e-01 : f32
    %15 = vector.broadcast %cst_8 : f32 to vector<32x32xf32>
    %16 = arith.mulf %15, %14 : vector<32x32xf32>
    %17 = arith.maximumf %14, %16 : vector<32x32xf32>
    %18 = arith.addf %17, %9 : vector<32x32xf32>
    %c0_9 = arith.constant 0 : index
    %c0_10 = arith.constant 0 : index
    %19 = vector.load %arg7[%c0_9, %c0_10] : memref<32x1xf32, #tpu.memory_space<vmem>>, vector<32x1xf32>
    %cst_11 = arith.constant dense<0xFF800000> : vector<32xf32>
    %20 = vector.multi_reduction <maximumf>, %18, %cst_11 [1] : vector<32x32xf32> to vector<32xf32>
    %21 = vector.shape_cast %20 : vector<32xf32> to vector<32x1xf32>
    %22 = arith.maximumf %19, %21 : vector<32x1xf32>
    %23 = arith.subf %19, %22 : vector<32x1xf32>
    %24 = math.exp %23 : vector<32x1xf32>
    %25 = vector.broadcast %22 : vector<32x1xf32> to vector<32x32xf32>
    %26 = arith.subf %18, %25 : vector<32x32xf32>
    %27 = math.exp %26 : vector<32x32xf32>
    %c0_12 = arith.constant 0 : index
    %c0_13 = arith.constant 0 : index
    %28 = vector.load %arg8[%c0_12, %c0_13] : memref<32x1xf32, #tpu.memory_space<vmem>>, vector<32x1xf32>
    %29 = arith.mulf %24, %28 : vector<32x1xf32>
    %cst_14 = arith.constant dense<0.000000e+00> : vector<32xf32>
    %30 = vector.multi_reduction <add>, %27, %cst_14 [1] : vector<32x32xf32> to vector<32xf32>
    %31 = vector.shape_cast %30 : vector<32xf32> to vector<32x1xf32>
    %32 = arith.addf %29, %31 : vector<32x1xf32>
    %c0_15 = arith.constant 0 : index
    %c0_16 = arith.constant 0 : index
    %33 = vector.load %arg8[%c0_15, %c0_16] : memref<32x1xf32, #tpu.memory_space<vmem>>, vector<32x1xf32>
    tpu.vector_store %arg8[%c0_15, %c0_16], %32 {strides = array<i32>} : memref<32x1xf32, #tpu.memory_space<vmem>>, vector<32x1xf32>,
    %c0_17 = arith.constant 0 : index
    %c0_18 = arith.constant 0 : index
    %34 = vector.load %arg9[%c0_17, %c0_18] : memref<32x4xf32, #tpu.memory_space<vmem>>, vector<32x4xf32>
    %35 = vector.broadcast %24 : vector<32x1xf32> to vector<32x4xf32>
    %36 = arith.mulf %35, %34 : vector<32x4xf32>
    %37 = arith.truncf %27 : vector<32x32xf32> to vector<32x32xbf16>
    %c0_19 = arith.constant 0 : index
    %c0_20 = arith.constant 0 : index
    %38 = vector.load %arg5[%c0_19, %c0_20] : memref<32x4xbf16, #tpu.memory_space<vmem>>, vector<32x4xbf16>
    %cst_21 = arith.constant dense<0.000000e+00> : vector<32x4xf32>
    %39 = tpu.matmul %37, %38, %cst_21 {dimension_numbers = #tpu.dot_dimension_numbers<[1], [0], [0], [1], [0, 0, 1, 1], [], []>} : vector<32x32xbf16>, vector<32x4xbf16>, vector<32x4xf32> -> vector<32x4xf32>
    %40 = arith.addf %36, %39 : vector<32x4xf32>
    %c0_22 = arith.constant 0 : index
    %c0_23 = arith.constant 0 : index
    %41 = vector.load %arg9[%c0_22, %c0_23] : memref<32x4xf32, #tpu.memory_space<vmem>>, vector<32x4xf32>
    tpu.vector_store %arg9[%c0_22, %c0_23], %40 {strides = array<i32>} : memref<32x4xf32, #tpu.memory_space<vmem>>, vector<32x4xf32>,
    %c0_24 = arith.constant 0 : index
    %c0_25 = arith.constant 0 : index
    %42 = vector.load %arg7[%c0_24, %c0_25] : memref<32x1xf32, #tpu.memory_space<vmem>>, vector<32x1xf32>
    tpu.vector_store %arg7[%c0_24, %c0_25], %22 {strides = array<i32>} : memref<32x1xf32, #tpu.memory_space<vmem>>, vector<32x1xf32>,
    %c0_i32_26 = arith.constant 0 : i32
    %43 = arith.cmpi eq, %arg1, %c0_i32_26 : i32
    %44 = arith.extui %43 : i1 to i32
    %c0_i32_27 = arith.constant 0 : i32
    %45 = arith.cmpi ne, %44, %c0_i32_27 : i32
    scf.if %45 {
      %c0_28 = arith.constant 0 : index
      %c0_29 = arith.constant 0 : index
      %46 = vector.load %arg9[%c0_28, %c0_29] : memref<32x4xf32, #tpu.memory_space<vmem>>, vector<32x4xf32>
      %c0_30 = arith.constant 0 : index
      %c0_31 = arith.constant 0 : index
      %47 = vector.load %arg8[%c0_30, %c0_31] : memref<32x1xf32, #tpu.memory_space<vmem>>, vector<32x1xf32>
      %48 = vector.broadcast %47 : vector<32x1xf32> to vector<32x4xf32>
      %49 = arith.divf %46, %48 : vector<32x4xf32>
      %cst_32 = arith.constant 0.000000e+00 : f32
      %50 = vector.broadcast %cst_32 : f32 to vector<32x4xf32>
      %51 = arith.cmpf ogt, %49, %50 : vector<32x4xf32>
      %cst_33 = arith.constant 0.000000e+00 : f32
      %52 = vector.broadcast %cst_33 : f32 to vector<32x4xf32>
      %53 = arith.minimumf %49, %52 : vector<32x4xf32>
      %54 = math.exp %53 : vector<32x4xf32>
      %cst_34 = arith.constant 1.000000e+00 : f32
      %55 = vector.broadcast %cst_34 : f32 to vector<32x4xf32>
      %56 = arith.subf %54, %55 : vector<32x4xf32>
      %57 = arith.select %51, %49, %56 : vector<32x4xi1>, vector<32x4xf32>
      %cst_35 = arith.constant dense<0xFF800000> : vector<32xf32>
      %58 = vector.multi_reduction <maximumf>, %57, %cst_35 [1] : vector<32x4xf32> to vector<32xf32>
      %59 = vector.shape_cast %58 : vector<32xf32> to vector<32x1xf32>
      %60 = vector.broadcast %59 : vector<32x1xf32> to vector<32x4xf32>
      %61 = arith.subf %57, %60 : vector<32x4xf32>
      %62 = math.exp %61 : vector<32x4xf32>
      %cst_36 = arith.constant dense<0.000000e+00> : vector<32xf32>
      %63 = vector.multi_reduction <add>, %62, %cst_36 [1] : vector<32x4xf32> to vector<32xf32>
      %64 = vector.shape_cast %63 : vector<32xf32> to vector<32x1xf32>
      %65 = math.log %64 : vector<32x1xf32>
      %66 = vector.broadcast %65 : vector<32x1xf32> to vector<32x4xf32>
      %67 = arith.subf %61, %66 : vector<32x4xf32>
      %c0_37 = arith.constant 0 : index
      %c0_38 = arith.constant 0 : index
      %68 = vector.load %arg6[%c0_37, %c0_38] : memref<32x4xf32, #tpu.memory_space<vmem>>, vector<32x4xf32>
      tpu.vector_store %arg6[%c0_37, %c0_38], %67 {strides = array<i32>} : memref<32x4xf32, #tpu.memory_space<vmem>>, vector<32x4xf32>,
    } else {
    }
    return
  }
  func.func @transform_0(%arg0: i32, %arg1: i32) -> (i32, i32) {
    %c0_i32 = arith.constant 0 : i32
    %c0_i32_0 = arith.constant 0 : i32
    return %arg0, %c0_i32 : i32, i32
  }
  func.func @transform_1(%arg0: i32, %arg1: i32) -> (i32, i32) {
    %c0_i32 = arith.constant 0 : i32
    %c0_i32_0 = arith.constant 0 : i32
    return %c0_i32, %arg1 : i32, i32
  }
  func.func @transform_2(%arg0: i32, %arg1: i32) -> (i32, i32) {
    %c0_i32 = arith.constant 0 : i32
    return %arg0, %arg1 : i32, i32
  }
  func.func @transform_3(%arg0: i32, %arg1: i32) -> (i32, i32) {
    %c0_i32 = arith.constant 0 : i32
    %c0_i32_0 = arith.constant 0 : i32
    return %arg1, %c0_i32 : i32, i32
  }
  func.func @transform_4(%arg0: i32, %arg1: i32) -> (i32, i32) {
    %c0_i32 = arith.constant 0 : i32
    %c0_i32_0 = arith.constant 0 : i32
    return %arg0, %c0_i32 : i32, i32
  }
}

module attributes {stable_mosaic.version = 11 : i64} {
  func.func @_heads_attn_kernel(%arg0: i32, %arg1: i32, %arg2: memref<32x4xf32, #tpu.memory_space<vmem>>, %arg3: memref<4x32xf32, #tpu.memory_space<vmem>>, %arg4: memref<32x32xi8, #tpu.memory_space<vmem>>, %arg5: memref<32x32xbf16, #tpu.memory_space<vmem>>, %arg6: memref<32x4xbf16, #tpu.memory_space<vmem>>, %arg7: memref<4x2xf32, #tpu.memory_space<vmem>>, %arg8: memref<32x4xbf16, #tpu.memory_space<vmem>>, %arg9: memref<32x2xf32, #tpu.memory_space<vmem>>, %arg10: memref<32x4xf32, #tpu.memory_space<vmem>>, %arg11: memref<32x4xf32, #tpu.memory_space<vmem>>, %arg12: memref<32x32xf32, #tpu.memory_space<vmem>>) attributes {dimension_semantics = [#tpu.dimension_semantics<parallel>, #tpu.dimension_semantics<arbitrary>], iteration_bounds = array<i64: 1, 1>, scalar_prefetch = 0 : i64, scratch_operands = 3 : i64, tpu.core_type = #tpu.core_type<tc>, window_params = [{transform_indices = @transform_0, window_bounds = array<i64: 32, 4>}, {transform_indices = @transform_1, window_bounds = array<i64: 4, 32>}, {pipeline_mode = #tpu.pipeline_mode<double_buffered>, transform_indices = @transform_2, window_bounds = array<i64: 32, 32>}, {transform_indices = @transform_3, window_bounds = array<i64: 32, 32>}, {pipeline_mode = #tpu.pipeline_mode<synchronous>, transform_indices = @transform_4, window_bounds = array<i64: 32, 4>}, {pipeline_mode = #tpu.pipeline_mode<synchronous>, transform_indices = @transform_5, window_bounds = array<i64: 4, 2>}, {transform_indices = @transform_6, window_bounds = array<i64: 32, 4>}, {transform_indices = @transform_7, window_bounds = array<i64: 32, 2>}]} {
    %c0_i32 = arith.constant 0 : i32
    %0 = arith.cmpi eq, %arg1, %c0_i32 : i32
    %1 = arith.extui %0 : i1 to i32
    %c0_i32_0 = arith.constant 0 : i32
    %2 = arith.cmpi ne, %1, %c0_i32_0 : i32
    scf.if %2 {
      %cst_82 = arith.constant 0xFF800000 : f32
      %146 = vector.broadcast %cst_82 : f32 to vector<32x4xf32>
      %c0_83 = arith.constant 0 : index
      %c0_84 = arith.constant 0 : index
      %147 = vector.load %arg10[%c0_83, %c0_84] : memref<32x4xf32, #tpu.memory_space<vmem>>, vector<32x4xf32>
      tpu.vector_store %arg10[%c0_83, %c0_84], %146 {strides = array<i32>} : memref<32x4xf32, #tpu.memory_space<vmem>>, vector<32x4xf32>,
      %cst_85 = arith.constant 0.000000e+00 : f32
      %148 = vector.broadcast %cst_85 : f32 to vector<32x4xf32>
      %c0_86 = arith.constant 0 : index
      %c0_87 = arith.constant 0 : index
      %149 = vector.load %arg11[%c0_86, %c0_87] : memref<32x4xf32, #tpu.memory_space<vmem>>, vector<32x4xf32>
      tpu.vector_store %arg11[%c0_86, %c0_87], %148 {strides = array<i32>} : memref<32x4xf32, #tpu.memory_space<vmem>>, vector<32x4xf32>,
      %cst_88 = arith.constant 0.000000e+00 : f32
      %150 = vector.broadcast %cst_88 : f32 to vector<32x32xf32>
      %c0_89 = arith.constant 0 : index
      %c0_90 = arith.constant 0 : index
      %151 = vector.load %arg12[%c0_89, %c0_90] : memref<32x32xf32, #tpu.memory_space<vmem>>, vector<32x32xf32>
      tpu.vector_store %arg12[%c0_89, %c0_90], %150 {strides = array<i32>} : memref<32x32xf32, #tpu.memory_space<vmem>>, vector<32x32xf32>,
    } else {
    }
    %c0 = arith.constant 0 : index
    %c0_1 = arith.constant 0 : index
    %3 = vector.load %arg4[%c0, %c0_1] : memref<32x32xi8, #tpu.memory_space<vmem>>, vector<32x32xi8>
    %4 = arith.sitofp %3 : vector<32x32xi8> to vector<32x32xf32>
    %cst = arith.constant 0.000000e+00 : f32
    %5 = vector.broadcast %cst : f32 to vector<32x32xf32>
    %6 = arith.cmpf ogt, %4, %5 : vector<32x32xf32>
    %cst_2 = arith.constant 0.000000e+00 : f32
    %cst_3 = arith.constant -9.000000e+15 : f32
    %7 = vector.broadcast %cst_2 : f32 to vector<32x32xf32>
    %8 = vector.broadcast %cst_3 : f32 to vector<32x32xf32>
    %9 = arith.select %6, %7, %8 : vector<32x32xi1>, vector<32x32xf32>
    %c0_4 = arith.constant 0 : index
    %c0_5 = arith.constant 0 : index
    %10 = vector.load %arg5[%c0_4, %c0_5] : memref<32x32xbf16, #tpu.memory_space<vmem>>, vector<32x32xbf16>
    %c0_6 = arith.constant 0 : index
    %c0_7 = arith.constant 0 : index
    %11 = vector.load %arg2[%c0_6, %c0_7] : memref<32x4xf32, #tpu.memory_space<vmem>>, vector<32x1xf32>
    %c0_8 = arith.constant 0 : index
    %c0_9 = arith.constant 0 : index
    %12 = vector.load %arg3[%c0_8, %c0_9] : memref<4x32xf32, #tpu.memory_space<vmem>>, vector<1x32xf32>
    %13 = vector.broadcast %11 : vector<32x1xf32> to vector<32x32xf32>
    %14 = vector.broadcast %12 : vector<1x32xf32> to vector<32x32xf32>
    %15 = arith.addf %13, %14 : vector<32x32xf32>
    %cst_10 = arith.constant 2.000000e-01 : f32
    %16 = vector.broadcast %cst_10 : f32 to vector<32x32xf32>
    %17 = arith.mulf %16, %15 : vector<32x32xf32>
    %18 = arith.maximumf %15, %17 : vector<32x32xf32>
    %19 = arith.addf %18, %9 : vector<32x32xf32>
    %c0_11 = arith.constant 0 : index
    %c0_12 = arith.constant 0 : index
    %20 = vector.load %arg10[%c0_11, %c0_12] : memref<32x4xf32, #tpu.memory_space<vmem>>, vector<32x1xf32>
    %cst_13 = arith.constant dense<0xFF800000> : vector<32xf32>
    %21 = vector.multi_reduction <maximumf>, %19, %cst_13 [1] : vector<32x32xf32> to vector<32xf32>
    %22 = vector.shape_cast %21 : vector<32xf32> to vector<32x1xf32>
    %23 = arith.maximumf %20, %22 : vector<32x1xf32>
    %24 = arith.subf %20, %23 : vector<32x1xf32>
    %25 = math.exp %24 : vector<32x1xf32>
    %26 = vector.broadcast %23 : vector<32x1xf32> to vector<32x32xf32>
    %27 = arith.subf %19, %26 : vector<32x32xf32>
    %28 = math.exp %27 : vector<32x32xf32>
    %c0_14 = arith.constant 0 : index
    %c0_15 = arith.constant 0 : index
    %29 = vector.load %arg11[%c0_14, %c0_15] : memref<32x4xf32, #tpu.memory_space<vmem>>, vector<32x1xf32>
    %30 = arith.mulf %25, %29 : vector<32x1xf32>
    %cst_16 = arith.constant dense<0.000000e+00> : vector<32xf32>
    %31 = vector.multi_reduction <add>, %28, %cst_16 [1] : vector<32x32xf32> to vector<32xf32>
    %32 = vector.shape_cast %31 : vector<32xf32> to vector<32x1xf32>
    %33 = arith.addf %30, %32 : vector<32x1xf32>
    %c0_17 = arith.constant 0 : index
    %c0_18 = arith.constant 0 : index
    %34 = vector.load %arg11[%c0_17, %c0_18] : memref<32x4xf32, #tpu.memory_space<vmem>>, vector<32x1xf32>
    tpu.vector_store %arg11[%c0_17, %c0_18], %33 {strides = array<i32>} : memref<32x4xf32, #tpu.memory_space<vmem>>, vector<32x1xf32>,
    %c0_19 = arith.constant 0 : index
    %c0_20 = arith.constant 0 : index
    %35 = vector.load %arg12[%c0_19, %c0_20] : memref<32x32xf32, #tpu.memory_space<vmem>>, vector<32x8xf32>
    %36 = vector.broadcast %25 : vector<32x1xf32> to vector<32x8xf32>
    %37 = arith.mulf %36, %35 : vector<32x8xf32>
    %38 = arith.truncf %28 : vector<32x32xf32> to vector<32x32xbf16>
    %39 = vector.extract_strided_slice %10 {offsets = [0, 0], sizes = [32, 8], strides = [1, 1]} : vector<32x32xbf16> to vector<32x8xbf16>
    %cst_21 = arith.constant dense<0.000000e+00> : vector<32x8xf32>
    %40 = tpu.matmul %38, %39, %cst_21 {dimension_numbers = #tpu.dot_dimension_numbers<[1], [0], [0], [1], [0, 0, 1, 1], [], []>} : vector<32x32xbf16>, vector<32x8xbf16>, vector<32x8xf32> -> vector<32x8xf32>
    %41 = arith.addf %37, %40 : vector<32x8xf32>
    %c0_22 = arith.constant 0 : index
    %c0_23 = arith.constant 0 : index
    %42 = vector.load %arg12[%c0_22, %c0_23] : memref<32x32xf32, #tpu.memory_space<vmem>>, vector<32x8xf32>
    tpu.vector_store %arg12[%c0_22, %c0_23], %41 {strides = array<i32>} : memref<32x32xf32, #tpu.memory_space<vmem>>, vector<32x8xf32>,
    %c0_24 = arith.constant 0 : index
    %c0_25 = arith.constant 0 : index
    %43 = vector.load %arg10[%c0_24, %c0_25] : memref<32x4xf32, #tpu.memory_space<vmem>>, vector<32x1xf32>
    tpu.vector_store %arg10[%c0_24, %c0_25], %23 {strides = array<i32>} : memref<32x4xf32, #tpu.memory_space<vmem>>, vector<32x1xf32>,
    %c0_26 = arith.constant 0 : index
    %c1 = arith.constant 1 : index
    %44 = vector.load %arg2[%c0_26, %c1] : memref<32x4xf32, #tpu.memory_space<vmem>>, vector<32x1xf32>
    %c1_27 = arith.constant 1 : index
    %c0_28 = arith.constant 0 : index
    %45 = vector.load %arg3[%c1_27, %c0_28] : memref<4x32xf32, #tpu.memory_space<vmem>>, vector<1x32xf32>
    %46 = vector.broadcast %44 : vector<32x1xf32> to vector<32x32xf32>
    %47 = vector.broadcast %45 : vector<1x32xf32> to vector<32x32xf32>
    %48 = arith.addf %46, %47 : vector<32x32xf32>
    %cst_29 = arith.constant 2.000000e-01 : f32
    %49 = vector.broadcast %cst_29 : f32 to vector<32x32xf32>
    %50 = arith.mulf %49, %48 : vector<32x32xf32>
    %51 = arith.maximumf %48, %50 : vector<32x32xf32>
    %52 = arith.addf %51, %9 : vector<32x32xf32>
    %c0_30 = arith.constant 0 : index
    %c1_31 = arith.constant 1 : index
    %53 = vector.load %arg10[%c0_30, %c1_31] : memref<32x4xf32, #tpu.memory_space<vmem>>, vector<32x1xf32>
    %cst_32 = arith.constant dense<0xFF800000> : vector<32xf32>
    %54 = vector.multi_reduction <maximumf>, %52, %cst_32 [1] : vector<32x32xf32> to vector<32xf32>
    %55 = vector.shape_cast %54 : vector<32xf32> to vector<32x1xf32>
    %56 = arith.maximumf %53, %55 : vector<32x1xf32>
    %57 = arith.subf %53, %56 : vector<32x1xf32>
    %58 = math.exp %57 : vector<32x1xf32>
    %59 = vector.broadcast %56 : vector<32x1xf32> to vector<32x32xf32>
    %60 = arith.subf %52, %59 : vector<32x32xf32>
    %61 = math.exp %60 : vector<32x32xf32>
    %c0_33 = arith.constant 0 : index
    %c1_34 = arith.constant 1 : index
    %62 = vector.load %arg11[%c0_33, %c1_34] : memref<32x4xf32, #tpu.memory_space<vmem>>, vector<32x1xf32>
    %63 = arith.mulf %58, %62 : vector<32x1xf32>
    %cst_35 = arith.constant dense<0.000000e+00> : vector<32xf32>
    %64 = vector.multi_reduction <add>, %61, %cst_35 [1] : vector<32x32xf32> to vector<32xf32>
    %65 = vector.shape_cast %64 : vector<32xf32> to vector<32x1xf32>
    %66 = arith.addf %63, %65 : vector<32x1xf32>
    %c0_36 = arith.constant 0 : index
    %c1_37 = arith.constant 1 : index
    %67 = vector.load %arg11[%c0_36, %c1_37] : memref<32x4xf32, #tpu.memory_space<vmem>>, vector<32x1xf32>
    tpu.vector_store %arg11[%c0_36, %c1_37], %66 {strides = array<i32>} : memref<32x4xf32, #tpu.memory_space<vmem>>, vector<32x1xf32>,
    %c0_38 = arith.constant 0 : index
    %c8 = arith.constant 8 : index
    %68 = vector.load %arg12[%c0_38, %c8] : memref<32x32xf32, #tpu.memory_space<vmem>>, vector<32x8xf32>
    %69 = vector.broadcast %58 : vector<32x1xf32> to vector<32x8xf32>
    %70 = arith.mulf %69, %68 : vector<32x8xf32>
    %71 = arith.truncf %61 : vector<32x32xf32> to vector<32x32xbf16>
    %72 = vector.extract_strided_slice %10 {offsets = [0, 8], sizes = [32, 8], strides = [1, 1]} : vector<32x32xbf16> to vector<32x8xbf16>
    %cst_39 = arith.constant dense<0.000000e+00> : vector<32x8xf32>
    %73 = tpu.matmul %71, %72, %cst_39 {dimension_numbers = #tpu.dot_dimension_numbers<[1], [0], [0], [1], [0, 0, 1, 1], [], []>} : vector<32x32xbf16>, vector<32x8xbf16>, vector<32x8xf32> -> vector<32x8xf32>
    %74 = arith.addf %70, %73 : vector<32x8xf32>
    %c0_40 = arith.constant 0 : index
    %c8_41 = arith.constant 8 : index
    %75 = vector.load %arg12[%c0_40, %c8_41] : memref<32x32xf32, #tpu.memory_space<vmem>>, vector<32x8xf32>
    tpu.vector_store %arg12[%c0_40, %c8_41], %74 {strides = array<i32>} : memref<32x32xf32, #tpu.memory_space<vmem>>, vector<32x8xf32>,
    %c0_42 = arith.constant 0 : index
    %c1_43 = arith.constant 1 : index
    %76 = vector.load %arg10[%c0_42, %c1_43] : memref<32x4xf32, #tpu.memory_space<vmem>>, vector<32x1xf32>
    tpu.vector_store %arg10[%c0_42, %c1_43], %56 {strides = array<i32>} : memref<32x4xf32, #tpu.memory_space<vmem>>, vector<32x1xf32>,
    %c0_44 = arith.constant 0 : index
    %c2 = arith.constant 2 : index
    %77 = vector.load %arg2[%c0_44, %c2] : memref<32x4xf32, #tpu.memory_space<vmem>>, vector<32x1xf32>
    %c2_45 = arith.constant 2 : index
    %c0_46 = arith.constant 0 : index
    %78 = vector.load %arg3[%c2_45, %c0_46] : memref<4x32xf32, #tpu.memory_space<vmem>>, vector<1x32xf32>
    %79 = vector.broadcast %77 : vector<32x1xf32> to vector<32x32xf32>
    %80 = vector.broadcast %78 : vector<1x32xf32> to vector<32x32xf32>
    %81 = arith.addf %79, %80 : vector<32x32xf32>
    %cst_47 = arith.constant 2.000000e-01 : f32
    %82 = vector.broadcast %cst_47 : f32 to vector<32x32xf32>
    %83 = arith.mulf %82, %81 : vector<32x32xf32>
    %84 = arith.maximumf %81, %83 : vector<32x32xf32>
    %85 = arith.addf %84, %9 : vector<32x32xf32>
    %c0_48 = arith.constant 0 : index
    %c2_49 = arith.constant 2 : index
    %86 = vector.load %arg10[%c0_48, %c2_49] : memref<32x4xf32, #tpu.memory_space<vmem>>, vector<32x1xf32>
    %cst_50 = arith.constant dense<0xFF800000> : vector<32xf32>
    %87 = vector.multi_reduction <maximumf>, %85, %cst_50 [1] : vector<32x32xf32> to vector<32xf32>
    %88 = vector.shape_cast %87 : vector<32xf32> to vector<32x1xf32>
    %89 = arith.maximumf %86, %88 : vector<32x1xf32>
    %90 = arith.subf %86, %89 : vector<32x1xf32>
    %91 = math.exp %90 : vector<32x1xf32>
    %92 = vector.broadcast %89 : vector<32x1xf32> to vector<32x32xf32>
    %93 = arith.subf %85, %92 : vector<32x32xf32>
    %94 = math.exp %93 : vector<32x32xf32>
    %c0_51 = arith.constant 0 : index
    %c2_52 = arith.constant 2 : index
    %95 = vector.load %arg11[%c0_51, %c2_52] : memref<32x4xf32, #tpu.memory_space<vmem>>, vector<32x1xf32>
    %96 = arith.mulf %91, %95 : vector<32x1xf32>
    %cst_53 = arith.constant dense<0.000000e+00> : vector<32xf32>
    %97 = vector.multi_reduction <add>, %94, %cst_53 [1] : vector<32x32xf32> to vector<32xf32>
    %98 = vector.shape_cast %97 : vector<32xf32> to vector<32x1xf32>
    %99 = arith.addf %96, %98 : vector<32x1xf32>
    %c0_54 = arith.constant 0 : index
    %c2_55 = arith.constant 2 : index
    %100 = vector.load %arg11[%c0_54, %c2_55] : memref<32x4xf32, #tpu.memory_space<vmem>>, vector<32x1xf32>
    tpu.vector_store %arg11[%c0_54, %c2_55], %99 {strides = array<i32>} : memref<32x4xf32, #tpu.memory_space<vmem>>, vector<32x1xf32>,
    %c0_56 = arith.constant 0 : index
    %c16 = arith.constant 16 : index
    %101 = vector.load %arg12[%c0_56, %c16] : memref<32x32xf32, #tpu.memory_space<vmem>>, vector<32x8xf32>
    %102 = vector.broadcast %91 : vector<32x1xf32> to vector<32x8xf32>
    %103 = arith.mulf %102, %101 : vector<32x8xf32>
    %104 = arith.truncf %94 : vector<32x32xf32> to vector<32x32xbf16>
    %105 = vector.extract_strided_slice %10 {offsets = [0, 16], sizes = [32, 8], strides = [1, 1]} : vector<32x32xbf16> to vector<32x8xbf16>
    %cst_57 = arith.constant dense<0.000000e+00> : vector<32x8xf32>
    %106 = tpu.matmul %104, %105, %cst_57 {dimension_numbers = #tpu.dot_dimension_numbers<[1], [0], [0], [1], [0, 0, 1, 1], [], []>} : vector<32x32xbf16>, vector<32x8xbf16>, vector<32x8xf32> -> vector<32x8xf32>
    %107 = arith.addf %103, %106 : vector<32x8xf32>
    %c0_58 = arith.constant 0 : index
    %c16_59 = arith.constant 16 : index
    %108 = vector.load %arg12[%c0_58, %c16_59] : memref<32x32xf32, #tpu.memory_space<vmem>>, vector<32x8xf32>
    tpu.vector_store %arg12[%c0_58, %c16_59], %107 {strides = array<i32>} : memref<32x32xf32, #tpu.memory_space<vmem>>, vector<32x8xf32>,
    %c0_60 = arith.constant 0 : index
    %c2_61 = arith.constant 2 : index
    %109 = vector.load %arg10[%c0_60, %c2_61] : memref<32x4xf32, #tpu.memory_space<vmem>>, vector<32x1xf32>
    tpu.vector_store %arg10[%c0_60, %c2_61], %89 {strides = array<i32>} : memref<32x4xf32, #tpu.memory_space<vmem>>, vector<32x1xf32>,
    %c0_62 = arith.constant 0 : index
    %c3 = arith.constant 3 : index
    %110 = vector.load %arg2[%c0_62, %c3] : memref<32x4xf32, #tpu.memory_space<vmem>>, vector<32x1xf32>
    %c3_63 = arith.constant 3 : index
    %c0_64 = arith.constant 0 : index
    %111 = vector.load %arg3[%c3_63, %c0_64] : memref<4x32xf32, #tpu.memory_space<vmem>>, vector<1x32xf32>
    %112 = vector.broadcast %110 : vector<32x1xf32> to vector<32x32xf32>
    %113 = vector.broadcast %111 : vector<1x32xf32> to vector<32x32xf32>
    %114 = arith.addf %112, %113 : vector<32x32xf32>
    %cst_65 = arith.constant 2.000000e-01 : f32
    %115 = vector.broadcast %cst_65 : f32 to vector<32x32xf32>
    %116 = arith.mulf %115, %114 : vector<32x32xf32>
    %117 = arith.maximumf %114, %116 : vector<32x32xf32>
    %118 = arith.addf %117, %9 : vector<32x32xf32>
    %c0_66 = arith.constant 0 : index
    %c3_67 = arith.constant 3 : index
    %119 = vector.load %arg10[%c0_66, %c3_67] : memref<32x4xf32, #tpu.memory_space<vmem>>, vector<32x1xf32>
    %cst_68 = arith.constant dense<0xFF800000> : vector<32xf32>
    %120 = vector.multi_reduction <maximumf>, %118, %cst_68 [1] : vector<32x32xf32> to vector<32xf32>
    %121 = vector.shape_cast %120 : vector<32xf32> to vector<32x1xf32>
    %122 = arith.maximumf %119, %121 : vector<32x1xf32>
    %123 = arith.subf %119, %122 : vector<32x1xf32>
    %124 = math.exp %123 : vector<32x1xf32>
    %125 = vector.broadcast %122 : vector<32x1xf32> to vector<32x32xf32>
    %126 = arith.subf %118, %125 : vector<32x32xf32>
    %127 = math.exp %126 : vector<32x32xf32>
    %c0_69 = arith.constant 0 : index
    %c3_70 = arith.constant 3 : index
    %128 = vector.load %arg11[%c0_69, %c3_70] : memref<32x4xf32, #tpu.memory_space<vmem>>, vector<32x1xf32>
    %129 = arith.mulf %124, %128 : vector<32x1xf32>
    %cst_71 = arith.constant dense<0.000000e+00> : vector<32xf32>
    %130 = vector.multi_reduction <add>, %127, %cst_71 [1] : vector<32x32xf32> to vector<32xf32>
    %131 = vector.shape_cast %130 : vector<32xf32> to vector<32x1xf32>
    %132 = arith.addf %129, %131 : vector<32x1xf32>
    %c0_72 = arith.constant 0 : index
    %c3_73 = arith.constant 3 : index
    %133 = vector.load %arg11[%c0_72, %c3_73] : memref<32x4xf32, #tpu.memory_space<vmem>>, vector<32x1xf32>
    tpu.vector_store %arg11[%c0_72, %c3_73], %132 {strides = array<i32>} : memref<32x4xf32, #tpu.memory_space<vmem>>, vector<32x1xf32>,
    %c0_74 = arith.constant 0 : index
    %c24 = arith.constant 24 : index
    %134 = vector.load %arg12[%c0_74, %c24] : memref<32x32xf32, #tpu.memory_space<vmem>>, vector<32x8xf32>
    %135 = vector.broadcast %124 : vector<32x1xf32> to vector<32x8xf32>
    %136 = arith.mulf %135, %134 : vector<32x8xf32>
    %137 = arith.truncf %127 : vector<32x32xf32> to vector<32x32xbf16>
    %138 = vector.extract_strided_slice %10 {offsets = [0, 24], sizes = [32, 8], strides = [1, 1]} : vector<32x32xbf16> to vector<32x8xbf16>
    %cst_75 = arith.constant dense<0.000000e+00> : vector<32x8xf32>
    %139 = tpu.matmul %137, %138, %cst_75 {dimension_numbers = #tpu.dot_dimension_numbers<[1], [0], [0], [1], [0, 0, 1, 1], [], []>} : vector<32x32xbf16>, vector<32x8xbf16>, vector<32x8xf32> -> vector<32x8xf32>
    %140 = arith.addf %136, %139 : vector<32x8xf32>
    %c0_76 = arith.constant 0 : index
    %c24_77 = arith.constant 24 : index
    %141 = vector.load %arg12[%c0_76, %c24_77] : memref<32x32xf32, #tpu.memory_space<vmem>>, vector<32x8xf32>
    tpu.vector_store %arg12[%c0_76, %c24_77], %140 {strides = array<i32>} : memref<32x32xf32, #tpu.memory_space<vmem>>, vector<32x8xf32>,
    %c0_78 = arith.constant 0 : index
    %c3_79 = arith.constant 3 : index
    %142 = vector.load %arg10[%c0_78, %c3_79] : memref<32x4xf32, #tpu.memory_space<vmem>>, vector<32x1xf32>
    tpu.vector_store %arg10[%c0_78, %c3_79], %122 {strides = array<i32>} : memref<32x4xf32, #tpu.memory_space<vmem>>, vector<32x1xf32>,
    %c0_i32_80 = arith.constant 0 : i32
    %143 = arith.cmpi eq, %arg1, %c0_i32_80 : i32
    %144 = arith.extui %143 : i1 to i32
    %c0_i32_81 = arith.constant 0 : i32
    %145 = arith.cmpi ne, %144, %c0_i32_81 : i32
    scf.if %145 {
      %c0_82 = arith.constant 0 : index
      %c0_83 = arith.constant 0 : index
      %146 = vector.load %arg12[%c0_82, %c0_83] : memref<32x32xf32, #tpu.memory_space<vmem>>, vector<32x8xf32>
      %c0_84 = arith.constant 0 : index
      %c0_85 = arith.constant 0 : index
      %147 = vector.load %arg11[%c0_84, %c0_85] : memref<32x4xf32, #tpu.memory_space<vmem>>, vector<32x1xf32>
      %148 = vector.broadcast %147 : vector<32x1xf32> to vector<32x8xf32>
      %149 = arith.divf %146, %148 : vector<32x8xf32>
      %c0_86 = arith.constant 0 : index
      %c0_87 = arith.constant 0 : index
      %150 = vector.load %arg12[%c0_86, %c0_87] : memref<32x32xf32, #tpu.memory_space<vmem>>, vector<32x8xf32>
      tpu.vector_store %arg12[%c0_86, %c0_87], %149 {strides = array<i32>} : memref<32x32xf32, #tpu.memory_space<vmem>>, vector<32x8xf32>,
      %c0_88 = arith.constant 0 : index
      %c8_89 = arith.constant 8 : index
      %151 = vector.load %arg12[%c0_88, %c8_89] : memref<32x32xf32, #tpu.memory_space<vmem>>, vector<32x8xf32>
      %c0_90 = arith.constant 0 : index
      %c1_91 = arith.constant 1 : index
      %152 = vector.load %arg11[%c0_90, %c1_91] : memref<32x4xf32, #tpu.memory_space<vmem>>, vector<32x1xf32>
      %153 = vector.broadcast %152 : vector<32x1xf32> to vector<32x8xf32>
      %154 = arith.divf %151, %153 : vector<32x8xf32>
      %c0_92 = arith.constant 0 : index
      %c8_93 = arith.constant 8 : index
      %155 = vector.load %arg12[%c0_92, %c8_93] : memref<32x32xf32, #tpu.memory_space<vmem>>, vector<32x8xf32>
      tpu.vector_store %arg12[%c0_92, %c8_93], %154 {strides = array<i32>} : memref<32x32xf32, #tpu.memory_space<vmem>>, vector<32x8xf32>,
      %c0_94 = arith.constant 0 : index
      %c16_95 = arith.constant 16 : index
      %156 = vector.load %arg12[%c0_94, %c16_95] : memref<32x32xf32, #tpu.memory_space<vmem>>, vector<32x8xf32>
      %c0_96 = arith.constant 0 : index
      %c2_97 = arith.constant 2 : index
      %157 = vector.load %arg11[%c0_96, %c2_97] : memref<32x4xf32, #tpu.memory_space<vmem>>, vector<32x1xf32>
      %158 = vector.broadcast %157 : vector<32x1xf32> to vector<32x8xf32>
      %159 = arith.divf %156, %158 : vector<32x8xf32>
      %c0_98 = arith.constant 0 : index
      %c16_99 = arith.constant 16 : index
      %160 = vector.load %arg12[%c0_98, %c16_99] : memref<32x32xf32, #tpu.memory_space<vmem>>, vector<32x8xf32>
      tpu.vector_store %arg12[%c0_98, %c16_99], %159 {strides = array<i32>} : memref<32x32xf32, #tpu.memory_space<vmem>>, vector<32x8xf32>,
      %c0_100 = arith.constant 0 : index
      %c24_101 = arith.constant 24 : index
      %161 = vector.load %arg12[%c0_100, %c24_101] : memref<32x32xf32, #tpu.memory_space<vmem>>, vector<32x8xf32>
      %c0_102 = arith.constant 0 : index
      %c3_103 = arith.constant 3 : index
      %162 = vector.load %arg11[%c0_102, %c3_103] : memref<32x4xf32, #tpu.memory_space<vmem>>, vector<32x1xf32>
      %163 = vector.broadcast %162 : vector<32x1xf32> to vector<32x8xf32>
      %164 = arith.divf %161, %163 : vector<32x8xf32>
      %c0_104 = arith.constant 0 : index
      %c24_105 = arith.constant 24 : index
      %165 = vector.load %arg12[%c0_104, %c24_105] : memref<32x32xf32, #tpu.memory_space<vmem>>, vector<32x8xf32>
      tpu.vector_store %arg12[%c0_104, %c24_105], %164 {strides = array<i32>} : memref<32x32xf32, #tpu.memory_space<vmem>>, vector<32x8xf32>,
      %c0_106 = arith.constant 0 : index
      %c0_107 = arith.constant 0 : index
      %166 = vector.load %arg12[%c0_106, %c0_107] : memref<32x32xf32, #tpu.memory_space<vmem>>, vector<32x32xf32>
      %cst_108 = arith.constant 0.000000e+00 : f32
      %167 = vector.broadcast %cst_108 : f32 to vector<32x32xf32>
      %168 = arith.cmpf ogt, %166, %167 : vector<32x32xf32>
      %cst_109 = arith.constant 0.000000e+00 : f32
      %169 = vector.broadcast %cst_109 : f32 to vector<32x32xf32>
      %170 = arith.minimumf %166, %169 : vector<32x32xf32>
      %171 = math.exp %170 : vector<32x32xf32>
      %cst_110 = arith.constant 1.000000e+00 : f32
      %172 = vector.broadcast %cst_110 : f32 to vector<32x32xf32>
      %173 = arith.subf %171, %172 : vector<32x32xf32>
      %174 = arith.select %168, %166, %173 : vector<32x32xi1>, vector<32x32xf32>
      %175 = arith.truncf %174 : vector<32x32xf32> to vector<32x32xbf16>
      %c0_111 = arith.constant 0 : index
      %c0_112 = arith.constant 0 : index
      %176 = vector.load %arg6[%c0_111, %c0_112] : memref<32x4xbf16, #tpu.memory_space<vmem>>, vector<32x4xbf16>
      %cst_113 = arith.constant dense<0.000000e+00> : vector<32x4xf32>
      %177 = tpu.matmul %175, %176, %cst_113 {dimension_numbers = #tpu.dot_dimension_numbers<[1], [0], [0], [1], [0, 0, 1, 1], [], []>} : vector<32x32xbf16>, vector<32x4xbf16>, vector<32x4xf32> -> vector<32x4xf32>
      %c0_114 = arith.constant 0 : index
      %c0_115 = arith.constant 0 : index
      %178 = vector.load %arg7[%c0_114, %c0_115] : memref<4x2xf32, #tpu.memory_space<vmem>>, vector<4x2xf32>
      %cst_116 = arith.constant dense<0.000000e+00> : vector<32x2xf32>
      %179 = tpu.matmul %177, %178, %cst_116 {dimension_numbers = #tpu.dot_dimension_numbers<[1], [0], [0], [1], [0, 0, 1, 1], [], []>} : vector<32x4xf32>, vector<4x2xf32>, vector<32x2xf32> -> vector<32x2xf32>
      %180 = arith.truncf %177 : vector<32x4xf32> to vector<32x4xbf16>
      %c0_117 = arith.constant 0 : index
      %c0_118 = arith.constant 0 : index
      %181 = vector.load %arg8[%c0_117, %c0_118] : memref<32x4xbf16, #tpu.memory_space<vmem>>, vector<32x4xbf16>
      tpu.vector_store %arg8[%c0_117, %c0_118], %180 {strides = array<i32>} : memref<32x4xbf16, #tpu.memory_space<vmem>>, vector<32x4xbf16>,
      %c0_119 = arith.constant 0 : index
      %c0_120 = arith.constant 0 : index
      %182 = vector.load %arg9[%c0_119, %c0_120] : memref<32x2xf32, #tpu.memory_space<vmem>>, vector<32x2xf32>
      tpu.vector_store %arg9[%c0_119, %c0_120], %179 {strides = array<i32>} : memref<32x2xf32, #tpu.memory_space<vmem>>, vector<32x2xf32>,
    } else {
    }
    return
  }
  func.func @transform_0(%arg0: i32, %arg1: i32) -> (i32, i32) {
    %c0_i32 = arith.constant 0 : i32
    %c0_i32_0 = arith.constant 0 : i32
    return %arg0, %c0_i32 : i32, i32
  }
  func.func @transform_1(%arg0: i32, %arg1: i32) -> (i32, i32) {
    %c0_i32 = arith.constant 0 : i32
    %c0_i32_0 = arith.constant 0 : i32
    return %c0_i32, %arg1 : i32, i32
  }
  func.func @transform_2(%arg0: i32, %arg1: i32) -> (i32, i32) {
    %c0_i32 = arith.constant 0 : i32
    return %arg0, %arg1 : i32, i32
  }
  func.func @transform_3(%arg0: i32, %arg1: i32) -> (i32, i32) {
    %c0_i32 = arith.constant 0 : i32
    %c0_i32_0 = arith.constant 0 : i32
    return %arg1, %c0_i32 : i32, i32
  }
  func.func @transform_4(%arg0: i32, %arg1: i32) -> (i32, i32) {
    %c0_i32 = arith.constant 0 : i32
    %c0_i32_0 = arith.constant 0 : i32
    %c0_i32_1 = arith.constant 0 : i32
    return %c0_i32, %c0_i32_0 : i32, i32
  }
  func.func @transform_5(%arg0: i32, %arg1: i32) -> (i32, i32) {
    %c0_i32 = arith.constant 0 : i32
    %c0_i32_0 = arith.constant 0 : i32
    %c0_i32_1 = arith.constant 0 : i32
    return %c0_i32, %c0_i32_0 : i32, i32
  }
  func.func @transform_6(%arg0: i32, %arg1: i32) -> (i32, i32) {
    %c0_i32 = arith.constant 0 : i32
    %c0_i32_0 = arith.constant 0 : i32
    return %arg0, %c0_i32 : i32, i32
  }
  func.func @transform_7(%arg0: i32, %arg1: i32) -> (i32, i32) {
    %c0_i32 = arith.constant 0 : i32
    %c0_i32_0 = arith.constant 0 : i32
    return %arg0, %c0_i32 : i32, i32
  }
}

</mosaic_0001>

<bundles_post_ra>
// kernel: rwr_process_forward.3
= control target key start
LH: loop header
LB: loop body
LE: loop exit
PB: predicated region body
PF: predicated region fallthrough
CT: control target
= control target key end

     0   :  { %v504_v0 = vmov 0   ;;  %vm22_vm0 = vcmask 7168   ;;  %v505_v5 = vmov -inf   ;;  %v506_v24 = vmov -9e+15   ;;  %s648_s0 = inlined_call_operand.vmem [shape: f32[32,1], index: 0, kind: input, shape index: {}]   ;;  %s649_s2 = inlined_call_operand.vmem [shape: s8[32,32], index: 2, kind: input, shape index: {}]   ;;  %s650_s1 = inlined_call_operand.vmem [shape: f32[1,32], index: 1, kind: input, shape index: {}]   ;;  %s651_s3 = inlined_call_operand.vmem [shape: bf16[32,4], index: 3, kind: input, shape index: {}]   ;;  %s652_s4 = inlined_call_operand.vmem [shape: f32[32,4], index: 4, kind: output, shape index: {}]  }
   0x1   :  { %453 = vset.pattern.permute.xlu1 %v504_v0  ;;  %452 = vset.pattern.permute.xlu0 %v504_v0  ;;  %v55_v1 = vld [vmem:[%s648_s0 + $0x10] sm:$0xff]  ;;  %v53_v2 = vld [vmem:[%s648_s0] sm:$0xff]  ;;  %v56_v3 = vld [vmem:[%s648_s0 + $0x18] sm:$0xff]  ;;  %23 = vst.msk [vmem:[#allocation2] sm:$0xff] %vm22_vm0, %v505_v5  ;;  %vm104_vm4 = vcmask 261120   ;;  %v507_v45 = vmov 0.0  }
   0x2   :  { %70 = vperm.xlu1 %453, %v55_v1   ;;  %60 = vperm.xlu0 %452, %v53_v2   ;;  %v54_v4 = vld [vmem:[%s648_s0 + $0x8] sm:$0xff]  ;;  %24 = vst.msk [vmem:[#allocation2 + $0x8] sm:$0xff] %vm22_vm0, %v505_v5  ;;  %25 = vst.msk [vmem:[#allocation2 + $0x10] sm:$0xff] %vm22_vm0, %v505_v5  ;;  %v36_v6 = vld [vmem:[%s649_s2] sm:$0xff]  ;;  %vm31_vm6 = vcmask 31744  }
   0x3   :  { %26 = vst.msk [vmem:[#allocation2 + $0x18] sm:$0xff] %vm22_vm0, %v505_v5  ;;  %v37_v7 = vunpack.c.0.s8 %v36_v6  ;;  %v39_v8 = vunpack.c.2.s8 %v36_v6  ;;  %v38_v9 = vunpack.c.1.s8 %v36_v6  ;;  %v427_v11 = vld [vmem:[%s650_s1] ss:$0 sm:$0xff]  ;;  %v40_v13 = vunpack.c.3.s8 %v36_v6  ;;  %27 = vst.msk [vmem:[#allocation3] sm:$0xff] %vm22_vm0, %v507_v45  ;;  %v454_v62 = vld [vmem:[%s651_s3 + $0x8] sm:$0xff]  }
   0x4   :  { %28 = vst.msk [vmem:[#allocation3 + $0x8] sm:$0xff] %vm22_vm0, %v507_v45  ;;  %29 = vst.msk [vmem:[#allocation3 + $0x10] sm:$0xff] %vm22_vm0, %v507_v45  ;;  %440 = vmatprep.subr.bf16.mxu0 %v454_v62  ;;  %v455_v63 = vld [vmem:[%s651_s3] sm:$0xff]  }
   0x5   :  { %v41_v10 = vcvt.s32.f32 %v37_v7  ;;  %v43_v12 = vcvt.s32.f32 %v39_v8  ;;  %v42_v16 = vcvt.s32.f32 %v38_v9  ;;  %v44_v21 = vcvt.s32.f32 %v40_v13  ;;  %30 = vst.msk [vmem:[#allocation3 + $0x18] sm:$0xff] %vm22_vm0, %v507_v45  ;;  %441 = vmatpush3.bf16.msra.mxu0 %v454_v62 }
   0x6   :  { %75 = vperm.xlu1 %453, %v56_v3   ;;  %65 = vperm.xlu0 %452, %v54_v4   ;;  %33 = vst.msk [vmem:[#allocation4 + $0x8] sm:$0xff] %vm31_vm6, %v507_v45  ;;  %32 = vst.msk [vmem:[#allocation4] sm:$0xff] %vm31_vm6, %v507_v45 }
   0x7   :  { %vm45_vm1 = vcmp.gt.f32.partialorder %v41_v10, 0.0  ;;  %vm47_vm2 = vcmp.gt.f32.partialorder %v43_v12, 0.0  ;;  %vm46_vm3 = vcmp.gt.f32.partialorder %v42_v16, 0.0  ;;  %vm48_vm5 = vcmp.gt.f32.partialorder %v44_v21, 0.0  ;;  %442 = vmatprep.subr.bf16.mxu0 %v455_v63  ;;  %34 = vst.msk [vmem:[#allocation4 + $0x10] sm:$0xff] %vm31_vm6, %v507_v45  ;;  %35 = vst.msk [vmem:[#allocation4 + $0x18] sm:$0xff] %vm31_vm6, %v507_v45 }
   0x8   :  { %v49_v25 = vsel %vm45_vm1, 0.0, %v506_v24  ;;  %v51_v30 = vsel %vm47_vm2, 0.0, %v506_v24  ;;  %v50_v34 = vsel %vm46_vm3, 0.0, %v506_v24  ;;  %v52_v39 = vsel %vm48_vm5, 0.0, %v506_v24  ;;  %v567_v46 = vld [vmem:[#allocation2] sm:$0xff] }
   0x9   :  { %v101_v49 = vld [vmem:[#allocation2 + $0x8] sm:$0xff]  ;;  %v572_v50 = vld [vmem:[#allocation2 + $0x10] sm:$0xff]  ;;  %443 = vmatpush3.bf16.msra.mxu0 %v455_v63 }
   0xa   :  { %v582_v56 = vld [vmem:[#allocation2 + $0x18] sm:$0xff] }
  0x7d   :  { %v71_v14 = vpop.permute.xlu1 %70  ;;  %v61_v15 = vpop.permute.xlu0 %60 }
  0x7e   :  { %v86_v17 = vadd.f32 %v427_v11, %v71_v14  ;;  %v84_v18 = vadd.f32 %v427_v11, %v61_v15 }
  0x80   :  { %v90_v19 = vmul.f32 0.2, %v86_v17  ;;  %v88_v20 = vmul.f32 0.2, %v84_v18 }
  0x81   :  { %v76_v22 = vpop.permute.xlu1 %75  ;;  %v66_v23 = vpop.permute.xlu0 %65 }
  0x82   :  { %v94_v26 = vmax.f32 %v86_v17, %v90_v19  ;;  %v92_v27 = vmax.f32 %v84_v18, %v88_v20  ;;  %v87_v28 = vadd.f32 %v427_v11, %v76_v22  ;;  %v85_v29 = vadd.f32 %v427_v11, %v66_v23 }
  0x84   :  { %v91_v31 = vmul.f32 0.2, %v87_v28  ;;  %v89_v32 = vmul.f32 0.2, %v85_v29  ;;  %v96_v33 = vadd.f32 %v92_v27, %v49_v25  ;;  %v98_v38 = vadd.f32 %v94_v26, %v51_v30 }
  0x86   :  { %v95_v35 = vmax.f32 %v87_v28, %v91_v31  ;;  %v93_v36 = vmax.f32 %v85_v29, %v89_v32  ;;  %v105_v37 = vsel %vm104_vm4, %v96_v33, -inf  ;;  %v111_v41 = vsel %vm104_vm4, %v98_v38, -inf  ;;  %v165_v28 = vld [vmem:[#allocation3] sm:$0xff]  ;;  %v167_v32 = vld [vmem:[#allocation3 + $0x10] sm:$0xff] }
  0x87   :  { %106 = vmax.xlane.f32.xlu0 %v105_v37 }
  0x88   :  { %v97_v40 = vadd.f32 %v93_v36, %v50_v34  ;;  %v99_v43 = vadd.f32 %v95_v35, %v52_v39  ;;  %v166_v34 = vld [vmem:[#allocation3 + $0x8] sm:$0xff]  ;;  %v168_v39 = vld [vmem:[#allocation3 + $0x18] sm:$0xff] }
  0x8a   :  { %v108_v42 = vsel %vm104_vm4, %v97_v40, -inf  ;;  %v114_v44 = vsel %vm104_vm4, %v99_v43, -inf }
  0x8b   :  { %112 = vmax.xlane.f32.xlu0 %v111_v41  ;;  %109 = vmax.xlane.f32.xlu1 %v108_v42 }
  0x8f   :  { %115 = vmax.xlane.f32.xlu0 %v114_v44 }
 0x110   :  { %v107_v47 = vpop.xlane.xlu0 %106 }
 0x111   :  { %v570_v48 = vmax.f32 %v567_v46, %v107_v47 }
 0x113   :  { %v121_v51 = vsub.f32 %v567_v46, %v570_v48  ;;  %304 = vst.msk [vmem:[#allocation2] sm:$0xff] %vm22_vm0, %v570_v48  ;;  %135 = vperm.xlu1 %453, %v570_v48  }
 0x114   :  { %v110_v52 = vpop.xlane.xlu1 %109  ;;  %v113_v53 = vpop.xlane.xlu0 %112 }
 0x115   :  { %v118_v54 = vmax.f32 %v101_v49, %v110_v52  ;;  %v580_v55 = vmax.f32 %v572_v50, %v113_v53  ;;  %v125_v23 = vmul.f32 1.442695, %v121_v51 }
 0x117   :  { %v122_v57 = vsub.f32 %v101_v49, %v118_v54  ;;  %305 = vst.msk [vmem:[#allocation2 + $0x8] sm:$0xff] %vm22_vm0, %v118_v54  ;;  %v123_v58 = vsub.f32 %v572_v50, %v580_v55  ;;  %306 = vst.msk [vmem:[#allocation2 + $0x10] sm:$0xff] %vm22_vm0, %v580_v55  ;;  %140 = vperm.xlu0 %452, %v118_v54   ;;  %145 = vperm.xlu1 %453, %v580_v55   ;;  %v194_v50 = vld [vmem:[#allocation4] sm:$0xff]  ;;  %v195_v54 = vld [vmem:[#allocation4 + $0x8] sm:$0xff] }
 0x118   :  { %v116_v59 = vpop.xlane.xlu0 %115 }
 0x119   :  { %v120_v60 = vmax.f32 %v582_v56, %v116_v59  ;;  %v127_v17 = vmul.f32 1.442695, %v122_v57  ;;  %v129_v26 = vmul.f32 1.442695, %v123_v58 }
 0x11b   :  { %v124_v61 = vsub.f32 %v582_v56, %v120_v60  ;;  %307 = vst.msk [vmem:[#allocation2 + $0x18] sm:$0xff] %vm22_vm0, %v120_v60  ;;  %150 = vperm.xlu1 %453, %v120_v60  }
 0x11d   :  { %v131_v27 = vmul.f32 1.442695, %v124_v61 }
 0x18e   :  { %v136_v0 = vpop.permute.xlu1 %135 }
 0x18f   :  { %v153_v1 = vsub.f32 %v96_v33, %v136_v0 }
 0x191   :  { %v157_v2 = vmul.f32 1.442695, %v153_v1  ;;  %v196_v1 = vld [vmem:[#allocation4 + $0x10] sm:$0xff] }
 0x192   :  { %v146_v3 = vpop.permute.xlu1 %145  ;;  %v141_v4 = vpop.permute.xlu0 %140 }
 0x193   :  { %456 = vpow2.f32 %v157_v2  ;;  %v155_v5 = vsub.f32 %v98_v38, %v146_v3  ;;  %v154_v6 = vsub.f32 %v97_v40, %v141_v4 }
 0x195   :  { %v161_v7 = vmul.f32 1.442695, %v155_v5  ;;  %v159_v8 = vmul.f32 1.442695, %v154_v6  ;;  %v197_v5 = vld [vmem:[#allocation4 + $0x18] sm:$0xff] }
 0x196   :  { %v151_v9 = vpop.permute.xlu1 %150 }
 0x197   :  { %458 = vpow2.f32 %v161_v7  ;;  %v156_v10 = vsub.f32 %v99_v43, %v151_v9 }
 0x198   :  { %460 = vpow2.f32 %v159_v8 }
 0x199   :  { %v163_v11 = vmul.f32 1.442695, %v156_v10 }
 0x19b   :  { %462 = vpow2.f32 %v163_v11 }
 0x19c   :  { %464 = vpow2.f32 %v127_v17 }
 0x19d   :  { %466 = vpow2.f32 %v125_v23 }
 0x19e   :  { %468 = vpow2.f32 %v129_v26 }
 0x19f   :  { %470 = vpow2.f32 %v131_v27 }
 0x1a0   :  { %v457_v12 = vpop.eup %456 }
 0x1a1   :  { %v173_v13 = vsel %vm104_vm4, %v457_v12, 0.0 }
 0x1a2   :  { %174 = vadd.xlane.f32.xlu0 %v173_v13 }
 0x1a4   :  { %v459_v14 = vpop.eup %458 }
 0x1a5   :  { %v461_v15 = vpop.eup %460  ;;  %v179_v16 = vsel %vm104_vm4, %v459_v14, 0.0 }
 0x1a6   :  { %180 = vadd.xlane.f32.xlu0 %v179_v16  ;;  %v176_v18 = vsel %vm104_vm4, %v461_v15, 0.0  ;;  %v222_v19 = vpack.c.bf16 %v461_v15, %v457_v12 }
 0x1a7   :  { %177 = vadd.xlane.f32.xlu1 %v176_v18 }
 0x1a8   :  { %v463_v20 = vpop.eup %462  ;;  %444 = vmatprep.mubr.msk.bf16.mxu0 %vm104_vm4, %v222_v19 }
 0x1a9   :  { %v182_v21 = vsel %vm104_vm4, %v463_v20, 0.0  ;;  %v223_v22 = vpack.c.bf16 %v463_v20, %v459_v14  ;;  %v465_v24 = vpop.eup %464 }
 0x1aa   :  { %183 = vadd.xlane.f32.xlu0 %v182_v21  ;;  %v467_v25 = vpop.eup %466  ;;  %v170_v37 = vmul.f32 %v465_v24, %v166_v34 }
 0x1ab   :  { %445 = vmatmul.mubr.msk.bf16.vlgmr.msra.gmra.mxu0 %vm104_vm4, %v223_v22  ;;  %v169_v29 = vmul.f32 %v467_v25, %v165_v28  ;;  %v469_v30 = vpop.eup %468 }
 0x1ac   :  { %v171_v35 = vmul.f32 %v469_v30, %v167_v32  ;;  %v471_v36 = vpop.eup %470 }
 0x1ad   :  { %v172_v43 = vmul.f32 %v471_v36, %v168_v39 }
 0x1b8   :  { %205 = vperm.xlu1 %453, %v465_v24  }
 0x1c0   :  { %200 = vperm.xlu0 %452, %v467_v25  }
 0x22b   :  { %v175_v31 = vpop.xlane.xlu0 %174 }
 0x22c   :  { %v185_v33 = vadd.f32 %v175_v31, %v169_v29 }
 0x22e   :  { %190 = vst.msk [vmem:[#allocation3] sm:$0xff] %vm22_vm0, %v185_v33 }
 0x22f   :  { %v181_v38 = vpop.xlane.xlu0 %180 }
 0x230   :  { %v178_v40 = vpop.xlane.xlu1 %177  ;;  %v187_v41 = vadd.f32 %v181_v38, %v171_v35 }
 0x231   :  { %v186_v42 = vadd.f32 %v178_v40, %v170_v37 }
 0x232   :  { %192 = vst.msk [vmem:[#allocation3 + $0x10] sm:$0xff] %vm22_vm0, %v187_v41 }
 0x233   :  { %191 = vst.msk [vmem:[#allocation3 + $0x8] sm:$0xff] %vm22_vm0, %v186_v42  ;;  %v184_v44 = vpop.xlane.xlu0 %183 }
 0x234   :  { %v188_v45 = vadd.f32 %v184_v44, %v172_v43  ;;  %v206_v55 = vpop.permute.xlu1 %205 }
 0x235   :  { %v315_v46 = vld [vmem:[#allocation3] sm:$0xff]  ;;  %v219_v59 = vmul.f32 %v206_v55, %v195_v54 }
 0x236   :  { %193 = vst.msk [vmem:[#allocation3 + $0x18] sm:$0xff] %vm22_vm0, %v188_v45  ;;  %321 = vperm.xlu1 %453, %v315_v46  }
 0x239   :  { %v317_v47 = vld [vmem:[#allocation3 + $0x10] sm:$0xff] }
 0x23a   :  { %v316_v48 = vld [vmem:[#allocation3 + $0x8] sm:$0xff]  ;;  %331 = vperm.xlu1 %453, %v317_v47  }
 0x23b   :  { %326 = vperm.xlu0 %452, %v316_v48   ;;  %v201_v51 = vpop.permute.xlu0 %200 }
 0x23c   :  { %v218_v53 = vmul.f32 %v201_v51, %v194_v50 }
 0x23d   :  { %v318_v49 = vld [vmem:[#allocation3 + $0x18] sm:$0xff] }
 0x23e   :  { %336 = vperm.xlu1 %453, %v318_v49  }
 0x23f   :  { %210 = vperm.xlu0 %452, %v469_v30  }
 0x242   :  { %215 = vperm.xlu1 %453, %v471_v36  }
 0x26b   :  { %v446_v52 = vpop.f32.mrf.mxu0 }
 0x26d   :  { %v280_v56 = vpop.f32.mrf.mxu0 }
 0x26e   :  { %v295_v57 = vadd.f32 %v280_v56, %v218_v53 }
 0x26f   :  { %v447_v58 = vpop.f32.mrf.mxu0 }
 0x270   :  { %300 = vst.msk [vmem:[#allocation4] sm:$0xff] %vm31_vm6, %v295_v57 }
 0x271   :  { %v283_v60 = vpop.f32.mrf.mxu0 }
 0x272   :  { %v296_v61 = vadd.f32 %v283_v60, %v219_v59 }
 0x274   :  { %301 = vst.msk [vmem:[#allocation4 + $0x8] sm:$0xff] %vm31_vm6, %v296_v61 }
 0x277   :  { %v311_v10 = vld [vmem:[#allocation4] sm:$0xff] }
 0x27b   :  { %v312_v16 = vld [vmem:[#allocation4 + $0x8] sm:$0xff] }
 0x2b1   :  { %v322_v62 = vpop.permute.xlu1 %321 }
 0x2b2   :  { %472 = vrcp.f32 %v322_v62 }
 0x2b5   :  { %v332_v63 = vpop.permute.xlu1 %331 }
 0x2b6   :  { %v327_v0 = vpop.permute.xlu0 %326 }
 0x2b7   :  { %474 = vrcp.f32 %v327_v0 }
 0x2b8   :  { %476 = vrcp.f32 %v332_v63 }
 0x2b9   :  { %v337_v2 = vpop.permute.xlu1 %336 }
 0x2ba   :  { %v211_v3 = vpop.permute.xlu0 %210  ;;  %478 = vrcp.f32 %v337_v2 }
 0x2bb   :  { %v220_v4 = vmul.f32 %v211_v3, %v196_v1 }
 0x2bd   :  { %v297_v6 = vadd.f32 %v446_v52, %v220_v4  ;;  %v216_v7 = vpop.permute.xlu1 %215 }
 0x2be   :  { %v221_v8 = vmul.f32 %v216_v7, %v197_v5 }
 0x2bf   :  { %v473_v9 = vpop.eup %472  ;;  %302 = vst.msk [vmem:[#allocation4 + $0x10] sm:$0xff] %vm31_vm6, %v297_v6 }
 0x2c0   :  { %v298_v11 = vadd.f32 %v447_v58, %v221_v8  ;;  %v340_v12 = vmul.f32 %v473_v9, %v311_v10 }
 0x2c2   :  { %303 = vst.msk [vmem:[#allocation4 + $0x18] sm:$0xff] %vm31_vm6, %v298_v11  ;;  %v351_v13 = vmin.f32 %v340_v12, 0.0  ;;  %vm347_vm7 = vcmp.gt.f32.partialorder %v340_v12, 0.0 }
 0x2c4   :  { %v475_v14 = vpop.eup %474  ;;  %v355_v15 = vmul.f32 1.442695, %v351_v13 }
 0x2c5   :  { %v342_v17 = vmul.f32 %v475_v14, %v312_v16  ;;  %v477_v18 = vpop.eup %476 }
 0x2c6   :  { %480 = vpow2.f32 %v355_v15  ;;  %v313_v19 = vld [vmem:[#allocation4 + $0x10] sm:$0xff] }
 0x2c7   :  { %v352_v20 = vmin.f32 %v342_v17, 0.0  ;;  %v344_v21 = vmul.f32 %v477_v18, %v313_v19  ;;  %v479_v22 = vpop.eup %478  ;;  %vm348_vm8 = vcmp.gt.f32.partialorder %v342_v17, 0.0 }
 0x2c9   :  { %v357_v23 = vmul.f32 1.442695, %v352_v20  ;;  %v353_v24 = vmin.f32 %v344_v21, 0.0  ;;  %v314_v25 = vld [vmem:[#allocation4 + $0x18] sm:$0xff]  ;;  %vm349_vm9 = vcmp.gt.f32.partialorder %v344_v21, 0.0 }
 0x2ca   :  { %v346_v26 = vmul.f32 %v479_v22, %v314_v25 }
 0x2cb   :  { %482 = vpow2.f32 %v357_v23  ;;  %v359_v27 = vmul.f32 1.442695, %v353_v24 }
 0x2cc   :  { %v354_v28 = vmin.f32 %v346_v26, 0.0  ;;  %vm350_vm10 = vcmp.gt.f32.partialorder %v346_v26, 0.0 }
 0x2cd   :  { %484 = vpow2.f32 %v359_v27 }
 0x2ce   :  { %v361_v29 = vmul.f32 1.442695, %v354_v28 }
 0x2d0   :  { %486 = vpow2.f32 %v361_v29 }
 0x2d3   :  { %v481_v30 = vpop.eup %480 }
 0x2d4   :  { %v432_v31 = vadd.f32 -1.0, %v481_v30 }
 0x2d6   :  { %v367_v32 = vsel %vm347_vm7, %v340_v12, %v432_v31 }
 0x2d7   :  { %v371_v33 = vsel %vm31_vm6, %v367_v32, -inf }
 0x2d8   :  { %v483_v34 = vpop.eup %482  ;;  %372 = vmax.xlane.f32.xlu0 %v371_v33 }
 0x2d9   :  { %v433_v35 = vadd.f32 -1.0, %v483_v34 }
 0x2da   :  { %v485_v36 = vpop.eup %484 }
 0x2db   :  { %v368_v37 = vsel %vm348_vm8, %v342_v17, %v433_v35  ;;  %v434_v38 = vadd.f32 -1.0, %v485_v36 }
 0x2dc   :  { %v374_v39 = vsel %vm31_vm6, %v368_v37, -inf }
 0x2dd   :  { %v487_v40 = vpop.eup %486  ;;  %375 = vmax.xlane.f32.xlu1 %v374_v39  ;;  %v369_v41 = vsel %vm349_vm9, %v344_v21, %v434_v38 }
 0x2de   :  { %v377_v42 = vsel %vm31_vm6, %v369_v41, -inf  ;;  %v435_v43 = vadd.f32 -1.0, %v487_v40 }
 0x2df   :  { %378 = vmax.xlane.f32.xlu0 %v377_v42 }
 0x2e0   :  { %v370_v44 = vsel %vm350_vm10, %v346_v26, %v435_v43 }
 0x2e1   :  { %v380_v45 = vsel %vm31_vm6, %v370_v44, -inf }
 0x2e3   :  { %381 = vmax.xlane.f32.xlu0 %v380_v45 }
 0x361   :  { %v373_v46 = vpop.xlane.xlu0 %372 }
 0x362   :  { %v383_v47 = vsub.f32 %v367_v32, %v373_v46 }
 0x364   :  { %v387_v48 = vmul.f32 1.442695, %v383_v47 }
 0x366   :  { %488 = vpow2.f32 %v387_v48  ;;  %v376_v49 = vpop.xlane.xlu1 %375 }
 0x367   :  { %v384_v50 = vsub.f32 %v368_v37, %v376_v49 }
 0x368   :  { %v379_v51 = vpop.xlane.xlu0 %378 }
 0x369   :  { %v389_v52 = vmul.f32 1.442695, %v384_v50  ;;  %v385_v53 = vsub.f32 %v369_v41, %v379_v51 }
 0x36b   :  { %490 = vpow2.f32 %v389_v52  ;;  %v391_v54 = vmul.f32 1.442695, %v385_v53 }
 0x36c   :  { %v382_v55 = vpop.xlane.xlu0 %381 }
 0x36d   :  { %492 = vpow2.f32 %v391_v54  ;;  %v386_v56 = vsub.f32 %v370_v44, %v382_v55 }
 0x36f   :  { %v393_v57 = vmul.f32 1.442695, %v386_v56 }
 0x371   :  { %494 = vpow2.f32 %v393_v57 }
 0x373   :  { %v489_v58 = vpop.eup %488 }
 0x374   :  { %v395_v59 = vsel %vm31_vm6, %v489_v58, 0.0 }
 0x375   :  { %396 = vadd.xlane.f32.xlu1 %v395_v59 }
 0x378   :  { %v491_v60 = vpop.eup %490 }
 0x379   :  { %v398_v61 = vsel %vm31_vm6, %v491_v60, 0.0 }
 0x37a   :  { %v493_v62 = vpop.eup %492  ;;  %399 = vadd.xlane.f32.xlu0 %v398_v61 }
 0x37b   :  { %v401_v63 = vsel %vm31_vm6, %v493_v62, 0.0 }
 0x37c   :  { %402 = vadd.xlane.f32.xlu1 %v401_v63 }
 0x37e   :  { %v495_v0 = vpop.eup %494 }
 0x37f   :  { %v404_v1 = vsel %vm31_vm6, %v495_v0, 0.0 }
 0x380   :  { %405 = vadd.xlane.f32.xlu0 %v404_v1 }
 0x3fe   :  { %v397_v2 = vpop.xlane.xlu1 %396 }
 0x3ff   :  { %496 = vlog2.f32 %v397_v2 }
 0x403   :  { %v400_v3 = vpop.xlane.xlu0 %399 }
 0x404   :  { %498 = vlog2.f32 %v400_v3 }
 0x405   :  { %v403_v4 = vpop.xlane.xlu1 %402 }
 0x406   :  { %500 = vlog2.f32 %v403_v4 }
 0x409   :  { %v406_v5 = vpop.xlane.xlu0 %405 }
 0x40a   :  { %502 = vlog2.f32 %v406_v5 }
 0x40c   :  { %v497_v6 = vpop.eup %496 }
 0x40d   :  { %v408_v7 = vmul.f32 0.6931472, %v497_v6 }
 0x40f   :  { %v415_v8 = vsub.f32 %v383_v47, %v408_v7 }
 0x411   :  { %v499_v9 = vpop.eup %498  ;;  %419 = vst.msk [vmem:[%s652_s4] sm:$0xff] %vm31_vm6, %v415_v8 }
 0x412   :  { %v410_v10 = vmul.f32 0.6931472, %v499_v9 }
 0x413   :  { %v501_v11 = vpop.eup %500 }
 0x414   :  { %v416_v12 = vsub.f32 %v384_v50, %v410_v10  ;;  %v412_v13 = vmul.f32 0.6931472, %v501_v11 }
 0x416   :  { %420 = vst.msk [vmem:[%s652_s4 + $0x8] sm:$0xff] %vm31_vm6, %v416_v12  ;;  %v417_v14 = vsub.f32 %v385_v53, %v412_v13 }
 0x417   :  { %v503_v15 = vpop.eup %502 }
 0x418   :  { %421 = vst.msk [vmem:[%s652_s4 + $0x10] sm:$0xff] %vm31_vm6, %v417_v14  ;;  %v414_v16 = vmul.f32 0.6931472, %v503_v15 }
 0x41a   :  { %v418_v17 = vsub.f32 %v386_v56, %v414_v16 }
 0x41c   :  { %422 = vst.msk [vmem:[%s652_s4 + $0x18] sm:$0xff] %vm31_vm6, %v418_v17 }

// kernel: rwr_process_forward.2
= control target key start
LH: loop header
LB: loop body
LE: loop exit
PB: predicated region body
PF: predicated region fallthrough
CT: control target
= control target key end

     0   :  { %v1748_v0 = vmov 0   ;;  %v1749_v5 = vmov 1   ;;  %v2394_v6 = vmov 2   ;;  %v1751_v7 = vmov 3   ;;  %s1756_s20 = smov 112   ;;  %s1757_s21 = smov 104   ;;  %s2386_s0 = inlined_call_operand.vmem [shape: f32[32,4], index: 0, kind: input, shape index: {}]   ;;  %s2387_s2 = inlined_call_operand.vmem [shape: s8[32,32], index: 2, kind: input, shape index: {}]   ;;  %s2388_s1 = inlined_call_operand.vmem [shape: f32[4,32], index: 1, kind: input, shape index: {}]   ;;  %s2389_s3 = inlined_call_operand.vmem [shape: bf16[32,32], index: 3, kind: input, shape index: {}]   ;;  %s2390_s4 = inlined_call_operand.vmem [shape: bf16[32,4], index: 4, kind: input, shape index: {}]   ;;  %s2391_s5 = inlined_call_operand.vmem [shape: f32[4,2], index: 5, kind: input, shape index: {}]   ;;  %s2392_s6 = inlined_call_operand.vmem [shape: bf16[32,4], index: 6, kind: output, shape index: {0}]   ;;  %s2393_s7 = inlined_call_operand.vmem [shape: f32[32,2], index: 7, kind: output, shape index: {1}]  }
   0x1   :  { %1611 = vset.pattern.permute.xlu1 %v1748_v0  ;;  %1610 = vset.pattern.permute.xlu0 %v1748_v0  ;;  %v67_v1 = vld [vmem:[%s2386_s0 + $0x10] sm:$0xff]  ;;  %v65_v2 = vld [vmem:[%s2386_s0] sm:$0xff]  ;;  %v68_v3 = vld [vmem:[%s2386_s0 + $0x18] sm:$0xff]  ;;  %vm30_vm0 = vcmask 31744   ;;  %v1752_v8 = vmov -inf   ;;  %vm39_vm4 = vcmask 261120  }
   0x2   :  { %82 = vperm.xlu1 %1611, %v67_v1   ;;  %72 = vperm.xlu0 %1610, %v65_v2   ;;  %v66_v4 = vld [vmem:[%s2386_s0 + $0x8] sm:$0xff]  ;;  %31 = vst.msk [vmem:[#allocation2] sm:$0xff] %vm30_vm0, %v1752_v8  ;;  %32 = vst.msk [vmem:[#allocation2 + $0x8] sm:$0xff] %vm30_vm0, %v1752_v8  ;;  %v44_v9 = vld [vmem:[%s2387_s2] sm:$0xff]  ;;  %v1753_v26 = vmov -9e+15  }
   0x3   :  { %33 = vst.msk [vmem:[#allocation2 + $0x10] sm:$0xff] %vm30_vm0, %v1752_v8  ;;  %34 = vst.msk [vmem:[#allocation2 + $0x18] sm:$0xff] %vm30_vm0, %v1752_v8  ;;  %v45_v10 = vunpack.c.0.s8 %v44_v9  ;;  %v48_v11 = vunpack.c.3.s8 %v44_v9  ;;  %v46_v12 = vunpack.c.1.s8 %v44_v9  ;;  %v1489_v14 = vld [vmem:[%s2388_s1] ss:$0 sm:$0xff]  ;;  %v47_v15 = vunpack.c.2.s8 %v44_v9  ;;  %v1494_v32 = vld [vmem:[%s2388_s1 + $0x1] ss:$0 sm:$0xff] }
   0x4   :  { %v1497_v61 = vld [vmem:[%s2388_s1 + $0x2] ss:$0 sm:$0xff]  ;;  %vm199_vm6 = vcmask 7168   ;;  %vm447_vm7 = vcmask 15368   ;;  %vm705_vm8 = vcmask 23568   ;;  %vm963_vm9 = vcmask 31768  }
   0x5   :  { %v49_v13 = vcvt.s32.f32 %v45_v10  ;;  %v52_v18 = vcvt.s32.f32 %v48_v11  ;;  %v50_v19 = vcvt.s32.f32 %v46_v12  ;;  %v51_v23 = vcvt.s32.f32 %v47_v15  ;;  %s1758_s22 = smov 8   ;;  %s1759_s23 = smov 16  }
   0x6   :  { %87 = vperm.xlu1 %1611, %v68_v3   ;;  %77 = vperm.xlu0 %1610, %v66_v4   ;;  %vm305_vm10 = vcmask 64512   ;;  %s1760_s24 = smov 24   ;;  %vm1366_vm11 = vcmask 1043456   ;;  %vm563_vm12 = vcmask 130112   ;;  %vm821_vm13 = vcmask 195712  }
   0x7   :  { %vm53_vm1 = vcmp.gt.f32.partialorder %v49_v13, 0.0  ;;  %vm56_vm2 = vcmp.gt.f32.partialorder %v52_v18, 0.0  ;;  %vm54_vm3 = vcmp.gt.f32.partialorder %v50_v19, 0.0  ;;  %vm55_vm5 = vcmp.gt.f32.partialorder %v51_v23, 0.0  ;;  %v1500_v18 = vld [vmem:[%s2388_s1 + $0x3] ss:$0 sm:$0xff] }
   0x8   :  { %v1833_v27 = vsel %vm53_vm1, 0.0, %v1753_v26  ;;  %v1841_v36 = vsel %vm56_vm2, 0.0, %v1753_v26  ;;  %v1843_v37 = vsel %vm54_vm3, 0.0, %v1753_v26  ;;  %v1847_v46 = vsel %vm55_vm5, 0.0, %v1753_v26 }
   0x9   :  { %vm1079_vm14 = vcmask 261312   ;;  %vm1471_vm5 = vcmask 27648  }
   0xa   :  { %1613 = vset.pattern.permute.xlu1 %v1749_v5  ;;  %1612 = vset.pattern.permute.xlu0 %v1749_v5 }
   0xb   :  { %326 = vperm.xlu1 %1613, %v66_v4   ;;  %321 = vperm.xlu0 %1612, %v65_v2  }
   0xf   :  { %331 = vperm.xlu1 %1613, %v67_v1   ;;  %336 = vperm.xlu0 %1612, %v68_v3  }
  0x13   :  { %1614 = vset.pattern.permute.xlu1 %v2394_v6  ;;  %1615 = vset.pattern.permute.xlu0 %v2394_v6 }
  0x14   :  { %579 = vperm.xlu1 %1614, %v65_v2   ;;  %584 = vperm.xlu0 %1615, %v66_v4  }
  0x18   :  { %589 = vperm.xlu1 %1614, %v67_v1   ;;  %1616 = vset.pattern.permute.xlu0 %v1751_v7 }
  0x19   :  { %837 = vperm.xlu0 %1616, %v65_v2  }
  0x1c   :  { %594 = vperm.xlu1 %1614, %v68_v3  }
  0x1d   :  { %852 = vperm.xlu0 %1616, %v68_v3  }
  0x20   :  { %1617 = vset.pattern.permute.xlu1 %v1751_v7 }
  0x21   :  { %842 = vperm.xlu1 %1617, %v66_v4   ;;  %1618 = vset.pattern.permute.xlu0 %v1749_v5 }
  0x25   :  { %847 = vperm.xlu1 %1617, %v67_v1  }
  0x29   :  { %1619 = vset.pattern.permute.xlu1 %v1748_v0 }
  0x7d   :  { %v83_v16 = vpop.permute.xlu1 %82  ;;  %v73_v17 = vpop.permute.xlu0 %72 }
  0x7e   :  { %v96_v20 = vadd.f32 %v1489_v14, %v83_v16  ;;  %v94_v21 = vadd.f32 %v1489_v14, %v73_v17 }
  0x80   :  { %v98_v22 = vmul.f32 0.2, %v94_v21  ;;  %v100_v28 = vmul.f32 0.2, %v96_v20 }
  0x81   :  { %v88_v24 = vpop.permute.xlu1 %87  ;;  %v78_v25 = vpop.permute.xlu0 %77 }
  0x82   :  { %v102_v29 = vmax.f32 %v94_v21, %v98_v22  ;;  %v97_v30 = vadd.f32 %v1489_v14, %v88_v24  ;;  %v95_v31 = vadd.f32 %v1489_v14, %v78_v25  ;;  %v104_v38 = vmax.f32 %v96_v20, %v100_v28 }
  0x84   :  { %v101_v33 = vmul.f32 0.2, %v97_v30  ;;  %v99_v34 = vmul.f32 0.2, %v95_v31  ;;  %v1839_v35 = vadd.f32 %v102_v29, %v1833_v27  ;;  %v1860_v55 = vadd.f32 %v104_v38, %v1847_v46 }
  0x86   :  { %v105_v39 = vmax.f32 %v97_v30, %v101_v33  ;;  %v103_v40 = vmax.f32 %v95_v31, %v99_v34  ;;  %v327_v41 = vpop.permute.xlu1 %326  ;;  %v115_v42 = vsel %vm39_vm4, %v1839_v35, -inf  ;;  %v322_v43 = vpop.permute.xlu0 %321  ;;  %v121_v2 = vsel %vm39_vm4, %v1860_v55, -inf }
  0x87   :  { %v344_v44 = vadd.f32 %v1494_v32, %v327_v41  ;;  %116 = vmax.xlane.f32.xlu1 %v115_v42  ;;  %v343_v45 = vadd.f32 %v1494_v32, %v322_v43 }
  0x88   :  { %v1850_v47 = vadd.f32 %v105_v39, %v1841_v36  ;;  %v1853_v48 = vadd.f32 %v103_v40, %v1843_v37 }
  0x89   :  { %v348_v49 = vmul.f32 0.2, %v344_v44  ;;  %v347_v50 = vmul.f32 0.2, %v343_v45 }
  0x8a   :  { %v332_v51 = vpop.permute.xlu1 %331  ;;  %v124_v52 = vsel %vm39_vm4, %v1850_v47, -inf  ;;  %v118_v53 = vsel %vm39_vm4, %v1853_v48, -inf  ;;  %v337_v54 = vpop.permute.xlu0 %336 }
  0x8b   :  { %v352_v56 = vmax.f32 %v344_v44, %v348_v49  ;;  %v351_v57 = vmax.f32 %v343_v45, %v347_v50  ;;  %v345_v58 = vadd.f32 %v1494_v32, %v332_v51  ;;  %125 = vmax.xlane.f32.xlu1 %v124_v52  ;;  %119 = vmax.xlane.f32.xlu0 %v118_v53 }
  0x8c   :  { %v346_v59 = vadd.f32 %v1494_v32, %v337_v54 }
  0x8d   :  { %v349_v60 = vmul.f32 0.2, %v345_v58  ;;  %v1866_v62 = vadd.f32 %v352_v56, %v1843_v37  ;;  %v1869_v63 = vadd.f32 %v351_v57, %v1833_v27  ;;  %v1754_v56 = vmov 0.0  }
  0x8e   :  { %v350_v1 = vmul.f32 0.2, %v346_v59  ;;  %41 = vst.msk [vmem:[#allocation4 + $0x8] sm:$0xff] %vm39_vm4, %v1754_v56  ;;  %40 = vst.msk [vmem:[#allocation4] sm:$0xff] %vm39_vm4, %v1754_v56 }
  0x8f   :  { %v353_v3 = vmax.f32 %v345_v58, %v349_v60  ;;  %v580_v4 = vpop.permute.xlu1 %579  ;;  %122 = vmax.xlane.f32.xlu0 %v121_v2  ;;  %v366_v8 = vsel %vm39_vm4, %v1866_v62, -inf  ;;  %v585_v9 = vpop.permute.xlu0 %584  ;;  %v363_v12 = vsel %vm39_vm4, %v1869_v63, -inf  ;;  %35 = vst.msk [vmem:[#allocation3] sm:$0xff] %vm30_vm0, %v1754_v56  ;;  %36 = vst.msk [vmem:[#allocation3 + $0x8] sm:$0xff] %vm30_vm0, %v1754_v56 }
  0x90   :  { %v354_v10 = vmax.f32 %v346_v59, %v350_v1  ;;  %v601_v11 = vadd.f32 %v1497_v61, %v580_v4  ;;  %367 = vmax.xlane.f32.xlu1 %v366_v8  ;;  %v602_v13 = vadd.f32 %v1497_v61, %v585_v9  ;;  %37 = vst.msk [vmem:[#allocation3 + $0x10] sm:$0xff] %vm30_vm0, %v1754_v56  ;;  %38 = vst.msk [vmem:[#allocation3 + $0x18] sm:$0xff] %vm30_vm0, %v1754_v56 }
  0x91   :  { %v1878_v14 = vadd.f32 %v353_v3, %v1847_v46  ;;  %42 = vst.msk [vmem:[#allocation4 + $0x10] sm:$0xff] %vm39_vm4, %v1754_v56  ;;  %43 = vst.msk [vmem:[#allocation4 + $0x18] sm:$0xff] %vm39_vm4, %v1754_v56 }
  0x92   :  { %v605_v15 = vmul.f32 0.2, %v601_v11  ;;  %v606_v16 = vmul.f32 0.2, %v602_v13  ;;  %v1881_v17 = vadd.f32 %v354_v10, %v1841_v36 }
  0x93   :  { %v590_v19 = vpop.permute.xlu1 %589  ;;  %364 = vmax.xlane.f32.xlu0 %v363_v12  ;;  %v369_v20 = vsel %vm39_vm4, %v1878_v14, -inf }
  0x94   :  { %v609_v21 = vmax.f32 %v601_v11, %v605_v15  ;;  %v603_v22 = vadd.f32 %v1497_v61, %v590_v19  ;;  %v610_v23 = vmax.f32 %v602_v13, %v606_v16  ;;  %v372_v24 = vsel %vm39_vm4, %v1881_v17, -inf  ;;  %v838_v25 = vpop.permute.xlu0 %837  ;;  %v1957_v16 = vld [vmem:[#allocation2 + $0x18] sm:$0xff] }
  0x95   :  { %373 = vmax.xlane.f32.xlu1 %v372_v24  ;;  %v859_v26 = vadd.f32 %v1500_v18, %v838_v25  ;;  %v1972_v24 = vld [vmem:[#allocation2 + $0x10] sm:$0xff] }
  0x96   :  { %v607_v28 = vmul.f32 0.2, %v603_v22  ;;  %v1891_v29 = vadd.f32 %v609_v21, %v1833_v27  ;;  %v1894_v30 = vadd.f32 %v610_v23, %v1843_v37 }
  0x97   :  { %v595_v31 = vpop.permute.xlu1 %594  ;;  %370 = vmax.xlane.f32.xlu0 %v369_v20  ;;  %v863_v32 = vmul.f32 0.2, %v859_v26 }
  0x98   :  { %v611_v33 = vmax.f32 %v603_v22, %v607_v28  ;;  %v604_v34 = vadd.f32 %v1497_v61, %v595_v31  ;;  %v621_v38 = vsel %vm39_vm4, %v1891_v29, -inf  ;;  %v624_v39 = vsel %vm39_vm4, %v1894_v30, -inf  ;;  %v853_v40 = vpop.permute.xlu0 %852 }
  0x99   :  { %625 = vmax.xlane.f32.xlu1 %v624_v39  ;;  %v867_v41 = vmax.f32 %v859_v26, %v863_v32  ;;  %v862_v42 = vadd.f32 %v1500_v18, %v853_v40 }
  0x9a   :  { %v608_v43 = vmul.f32 0.2, %v604_v34  ;;  %v1901_v44 = vadd.f32 %v611_v33, %v1847_v46 }
  0x9b   :  { %622 = vmax.xlane.f32.xlu0 %v621_v38  ;;  %v866_v45 = vmul.f32 0.2, %v862_v42  ;;  %v1906_v52 = vadd.f32 %v867_v41, %v1833_v27 }
  0x9c   :  { %v612_v49 = vmax.f32 %v604_v34, %v608_v43  ;;  %v843_v50 = vpop.permute.xlu1 %842  ;;  %v627_v51 = vsel %vm39_vm4, %v1901_v44, -inf }
  0x9d   :  { %v860_v53 = vadd.f32 %v1500_v18, %v843_v50  ;;  %v870_v57 = vmax.f32 %v862_v42, %v866_v45  ;;  %v879_v60 = vsel %vm39_vm4, %v1906_v52, -inf }
  0x9e   :  { %v1909_v54 = vadd.f32 %v612_v49, %v1841_v36 }
  0x9f   :  { %v864_v27 = vmul.f32 0.2, %v860_v53  ;;  %628 = vmax.xlane.f32.xlu0 %v627_v51  ;;  %v1927_v4 = vadd.f32 %v870_v57, %v1841_v36  ;;  %v1941_v36 = vld [vmem:[%s2389_s3 + $0x8] sm:$0xff]  }
  0xa0   :  { %v630_v58 = vsel %vm39_vm4, %v1909_v54, -inf  ;;  %v848_v59 = vpop.permute.xlu1 %847  ;;  %1549 = vmatprep.subr.bf16.mxu0 %v1941_v36 }
  0xa1   :  { %v868_v61 = vmax.f32 %v860_v53, %v864_v27  ;;  %631 = vmax.xlane.f32.xlu1 %v630_v58  ;;  %v861_v1 = vadd.f32 %v1500_v18, %v848_v59  ;;  %v888_v10 = vsel %vm39_vm4, %v1927_v4, -inf  ;;  %1550 = vmatpush3.bf16.msra.mxu0 %v1941_v36  ;;  %v1959_v18 = vld [vmem:[#allocation2 + $0x8] sm:$0xff] }
  0xa3   :  { %v865_v2 = vmul.f32 0.2, %v861_v1  ;;  %v1924_v3 = vadd.f32 %v868_v61, %v1843_v37  ;;  %880 = vmax.xlane.f32.xlu0 %v879_v60  ;;  %v1948_v37 = vld [vmem:[%s2389_s3] sm:$0xff]   ;;  %s1755_s3 = smov 120  }
  0xa4   :  { %1551 = vmatprep.subr.bf16.mxu0 %v1948_v37 }
  0xa5   :  { %v869_v8 = vmax.f32 %v861_v1, %v865_v2  ;;  %v882_v9 = vsel %vm39_vm4, %v1924_v3, -inf  ;;  %1552 = vmatpush3.bf16.msra.mxu0 %v1948_v37 }
  0xa6   :  { %883 = vmax.xlane.f32.xlu1 %v882_v9 }
  0xa7   :  { %v1934_v11 = vadd.f32 %v869_v8, %v1847_v46  ;;  %v1952_v46 = vld [vmem:[#allocation2] sm:$0xff] }
  0xa9   :  { %v885_v12 = vsel %vm39_vm4, %v1934_v11, -inf }
  0xaa   :  { %889 = vmax.xlane.f32.xlu1 %v888_v10  ;;  %886 = vmax.xlane.f32.xlu0 %v885_v12 }
 0x110   :  { %v117_v13 = vpop.xlane.xlu1 %116 }
 0x111   :  { %v1955_v15 = vmax.f32 %v1952_v46, %v117_v13 }
 0x113   :  { %310 = vst.msk [vmem:[#allocation2] sm:$0xff] %vm199_vm6, %v1955_v15  ;;  %145 = vperm.xlu1 %1619, %v1955_v15  }
 0x114   :  { %v126_v20 = vpop.xlane.xlu1 %125  ;;  %v120_v21 = vpop.xlane.xlu0 %119 }
 0x115   :  { %v1967_v22 = vmax.f32 %v1957_v16, %v126_v20  ;;  %v1970_v23 = vmax.f32 %v1959_v18, %v120_v21 }
 0x117   :  { %313 = vst.msk [vmem:[#allocation2 + $0x18] sm:$0xff] %vm199_vm6, %v1967_v22  ;;  %311 = vst.msk [vmem:[#allocation2 + $0x8] sm:$0xff] %vm199_vm6, %v1970_v23  ;;  %150 = vperm.xlu1 %1619, %v1970_v23  }
 0x118   :  { %v123_v25 = vpop.xlane.xlu0 %122 }
 0x119   :  { %v1980_v26 = vmax.f32 %v1972_v24, %v123_v25  ;;  %v368_v28 = vpop.xlane.xlu1 %367 }
 0x11a   :  { %v1985_v31 = vld [vmem:[#allocation2] sm:$0xff] }
 0x11b   :  { %312 = vst.msk [vmem:[#allocation2 + $0x10] sm:$0xff] %vm199_vm6, %v1980_v26  ;;  %155 = vperm.xlu1 %1619, %v1980_v26  }
 0x11c   :  { %v365_v32 = vpop.xlane.xlu0 %364 }
 0x11d   :  { %v1988_v33 = vmax.f32 %v1985_v31, %v365_v32 }
 0x11e   :  { %v1990_v34 = vld [vmem:[#allocation2 + $0x8] sm:$0xff]  ;;  %v1992_v38 = vld [vmem:[#allocation2 + $0x18] sm:$0xff]  ;;  %v374_v39 = vpop.xlane.xlu1 %373 }
 0x11f   :  { %v1995_v40 = vmax.f32 %v1990_v34, %v368_v28  ;;  %568 = vst.msk [vmem:[#allocation2] sm:$0xff] %vm447_vm7, %v1988_v33  ;;  %v2000_v41 = vmax.f32 %v1992_v38, %v374_v39  ;;  %160 = vperm.xlu1 %1619, %v1967_v22   ;;  %393 = vperm.xlu0 %1618, %v1988_v33  }
 0x120   :  { %v371_v42 = vpop.xlane.xlu0 %370 }
 0x121   :  { %569 = vst.msk [vmem:[#allocation2 + $0x8] sm:$0xff] %vm447_vm7, %v1995_v40  ;;  %571 = vst.msk [vmem:[#allocation2 + $0x18] sm:$0xff] %vm447_vm7, %v2000_v41 }
 0x122   :  { %v2008_v43 = vld [vmem:[#allocation2 + $0x10] sm:$0xff]  ;;  %v626_v49 = vpop.xlane.xlu1 %625 }
 0x123   :  { %v2011_v45 = vmax.f32 %v2008_v43, %v371_v42  ;;  %1620 = vset.pattern.permute.xlu1 %v1749_v5  ;;  %1622 = vset.pattern.permute.xlu0 %v2394_v6 }
 0x124   :  { %398 = vperm.xlu1 %1620, %v1995_v40   ;;  %v623_v50 = vpop.xlane.xlu0 %622 }
 0x125   :  { %570 = vst.msk [vmem:[#allocation2 + $0x10] sm:$0xff] %vm447_vm7, %v2011_v45 }
 0x126   :  { %v2018_v51 = vld [vmem:[#allocation2] sm:$0xff] }
 0x127   :  { %v2021_v53 = vmax.f32 %v2018_v51, %v623_v50 }
 0x128   :  { %v2023_v56 = vld [vmem:[#allocation2 + $0x8] sm:$0xff]  ;;  %403 = vperm.xlu1 %1620, %v2011_v45   ;;  %v2026_v27 = vld [vmem:[#allocation2 + $0x18] sm:$0xff]  ;;  %v629_v57 = vpop.xlane.xlu0 %628 }
 0x129   :  { %v2029_v58 = vmax.f32 %v2023_v56, %v626_v49  ;;  %v637_v59 = vsub.f32 %v2018_v51, %v2021_v53  ;;  %826 = vst.msk [vmem:[#allocation2] sm:$0xff] %vm705_vm8, %v2021_v53 }
 0x12a   :  { %v632_v60 = vpop.xlane.xlu1 %631 }
 0x12b   :  { %v638_v61 = vsub.f32 %v2023_v56, %v2029_v58  ;;  %827 = vst.msk [vmem:[#allocation2 + $0x8] sm:$0xff] %vm705_vm8, %v2029_v58  ;;  %v2040_v1 = vmax.f32 %v2026_v27, %v632_v60  ;;  %656 = vperm.xlu0 %1622, %v2029_v58  }
 0x12c   :  { %408 = vperm.xlu1 %1620, %v2000_v41   ;;  %v2044_v2 = vld [vmem:[#allocation2 + $0x10] sm:$0xff]  ;;  %v881_v10 = vpop.xlane.xlu0 %880 }
 0x12d   :  { %v640_v8 = vsub.f32 %v2026_v27, %v2040_v1  ;;  %829 = vst.msk [vmem:[#allocation2 + $0x18] sm:$0xff] %vm705_vm8, %v2040_v1  ;;  %v2051_v9 = vmax.f32 %v2044_v2, %v629_v57 }
 0x12f   :  { %v639_v12 = vsub.f32 %v2044_v2, %v2051_v9  ;;  %828 = vst.msk [vmem:[#allocation2 + $0x10] sm:$0xff] %vm705_vm8, %v2051_v9  ;;  %484 = vrot.lane.b32.xlu0 %v1941_v36, %s1755_s3  ;;  %v884_v13 = vpop.xlane.xlu1 %883 }
 0x130   :  { %1621 = vset.pattern.permute.xlu1 %v2394_v6  ;;  %v2060_v20 = vld [vmem:[#allocation2] sm:$0xff]  ;;  %1623 = vset.pattern.permute.xlu0 %v1751_v7 }
 0x131   :  { %v2064_v21 = vmax.f32 %v2060_v20, %v881_v10  ;;  %651 = vperm.xlu1 %1621, %v2021_v53   ;;  %v133_v10 = vsub.f32 %v1972_v24, %v1980_v26  ;;  %v381_v26 = vsub.f32 %v2008_v43, %v2011_v45 }
 0x132   :  { %v2067_v25 = vld [vmem:[#allocation2 + $0x8] sm:$0xff] }
 0x133   :  { %v2070_v28 = vmax.f32 %v2067_v25, %v884_v13  ;;  %v895_v32 = vsub.f32 %v2060_v20, %v2064_v21  ;;  %1084 = vst.msk [vmem:[#allocation2] sm:$0xff] %vm963_vm9, %v2064_v21  ;;  %909 = vperm.xlu0 %1623, %v2064_v21   ;;  %v890_v39 = vpop.xlane.xlu1 %889  ;;  %v887_v49 = vpop.xlane.xlu0 %886 }
 0x134   :  { %v2077_v42 = vld [vmem:[#allocation2 + $0x18] sm:$0xff] }
 0x135   :  { %v896_v50 = vsub.f32 %v2067_v25, %v2070_v28  ;;  %1085 = vst.msk [vmem:[#allocation2 + $0x8] sm:$0xff] %vm963_vm9, %v2070_v28  ;;  %v2084_v57 = vmax.f32 %v2077_v42, %v890_v39  ;;  %661 = vperm.xlu1 %1621, %v2051_v9   ;;  %v132_v39 = vsub.f32 %v1959_v18, %v1970_v23  ;;  %v139_v23 = vmul.f32 1.442695, %v133_v10 }
 0x136   :  { %v2087_v60 = vld [vmem:[#allocation2 + $0x10] sm:$0xff]  ;;  %v134_v18 = vsub.f32 %v1957_v16, %v1967_v22  ;;  %v899_v2 = vmul.f32 1.442695, %v895_v32 }
 0x137   :  { %1087 = vst.msk [vmem:[#allocation2 + $0x18] sm:$0xff] %vm963_vm9, %v2084_v57  ;;  %v2094_v13 = vmax.f32 %v2087_v60, %v887_v49  ;;  %924 = vperm.xlu0 %1623, %v2084_v57   ;;  %v137_v49 = vmul.f32 1.442695, %v132_v39  ;;  %v379_v39 = vsub.f32 %v1985_v31, %v1988_v33  ;;  %v387_v33 = vmul.f32 1.442695, %v381_v26 }
 0x138   :  { %v141_v19 = vmul.f32 1.442695, %v134_v18 }
 0x139   :  { %1086 = vst.msk [vmem:[#allocation2 + $0x10] sm:$0xff] %vm963_vm9, %v2094_v13  ;;  %666 = vperm.xlu1 %1621, %v2040_v1   ;;  %1644 = vpow2.f32 %v137_v49  ;;  %v383_v24 = vmul.f32 1.442695, %v379_v39  ;;  %v2396_v9 = vsub.f32 %v2087_v60, %v2094_v13  ;;  %v2397_v1 = vsub.f32 %v1952_v46, %v1955_v15 }
 0x13a   :  { %1646 = vpow2.f32 %v139_v23 }
 0x13b   :  { %740 = vrot.lane.b32.xlu0 %v1948_v37, %s1756_s20  ;;  %1648 = vpow2.f32 %v141_v19  ;;  %v382_v19 = vsub.f32 %v1992_v38, %v2000_v41 }
 0x13c   :  { %1627 = vset.pattern.permute.xlu0 %v2394_v6  ;;  %1650 = vpow2.f32 %v383_v24 }
 0x13d   :  { %482 = vrot.lane.b32.xlu1 %v1948_v37, %s1755_s3 }
 0x13e   :  { %1624 = vset.pattern.permute.xlu1 %v1751_v7 }
 0x13f   :  { %998 = vrot.lane.b32.xlu0 %v1948_v37, %s1757_s21  ;;  %v380_v37 = vsub.f32 %v1990_v34, %v1995_v40 }
 0x141   :  { %914 = vperm.xlu1 %1624, %v2070_v28   ;;  %v385_v22 = vmul.f32 1.442695, %v380_v37 }
 0x143   :  { %1652 = vpow2.f32 %v385_v22 }
 0x144   :  { %1654 = vpow2.f32 %v387_v33 }
 0x145   :  { %919 = vperm.xlu1 %1624, %v2094_v13  }
 0x146   :  { %v2123_v16 = vpop.eup %1644 }
 0x147   :  { %v2128_v31 = vpop.eup %1646 }
 0x148   :  { %v2133_v34 = vpop.eup %1648 }
 0x149   :  { %742 = vrot.lane.b32.xlu1 %v1941_v36, %s1756_s20  ;;  %v2136_v40 = vpop.eup %1650 }
 0x14a   :  { %1625 = vset.pattern.permute.xlu1 %v1748_v0 }
 0x14d   :  { %1000 = vrot.lane.b32.xlu1 %v1941_v36, %s1757_s21  ;;  %v389_v36 = vmul.f32 1.442695, %v382_v19 }
 0x14f   :  { %1656 = vpow2.f32 %v389_v36 }
 0x150   :  { %v2140_v43 = vpop.eup %1652 }
 0x151   :  { %215 = vperm.xlu1 %1625, %v2123_v16   ;;  %v2143_v38 = vpop.eup %1654 }
 0x155   :  { %220 = vperm.xlu1 %1625, %v2128_v31  }
 0x159   :  { %225 = vperm.xlu1 %1625, %v2133_v34  }
 0x15c   :  { %v2146_v41 = vpop.eup %1656 }
 0x15d   :  { %1626 = vset.pattern.permute.xlu1 %v1749_v5 }
 0x15e   :  { %458 = vperm.xlu1 %1626, %v2136_v40  }
 0x162   :  { %463 = vperm.xlu1 %1626, %v2140_v43  }
 0x166   :  { %468 = vperm.xlu1 %1626, %v2143_v38  }
 0x16a   :  { %473 = vperm.xlu1 %1626, %v2146_v41  }
 0x16e   :  { %1628 = vset.pattern.permute.xlu1 %v2394_v6 }
 0x18e   :  { %v146_v45 = vpop.permute.xlu1 %145 }
 0x18f   :  { %v163_v10 = vsub.f32 %v1839_v35, %v146_v45 }
 0x191   :  { %v167_v49 = vmul.f32 1.442695, %v163_v10 }
 0x192   :  { %v151_v18 = vpop.permute.xlu1 %150 }
 0x193   :  { %1658 = vpow2.f32 %v167_v49  ;;  %v164_v23 = vsub.f32 %v1853_v48, %v151_v18 }
 0x195   :  { %v169_v39 = vmul.f32 1.442695, %v164_v23 }
 0x196   :  { %v156_v37 = vpop.permute.xlu1 %155 }
 0x197   :  { %1660 = vpow2.f32 %v169_v39  ;;  %v165_v24 = vsub.f32 %v1860_v55, %v156_v37 }
 0x199   :  { %v171_v22 = vmul.f32 1.442695, %v165_v24 }
 0x19a   :  { %v161_v26 = vpop.permute.xlu1 %160  ;;  %v394_v19 = vpop.permute.xlu0 %393 }
 0x19b   :  { %1662 = vpow2.f32 %v171_v22  ;;  %v166_v33 = vsub.f32 %v1850_v47, %v161_v26  ;;  %v411_v36 = vsub.f32 %v1869_v63, %v394_v19 }
 0x19d   :  { %v173_v6 = vmul.f32 1.442695, %v166_v33  ;;  %v415_v35 = vmul.f32 1.442695, %v411_v36 }
 0x19f   :  { %1664 = vpow2.f32 %v173_v6  ;;  %v399_v45 = vpop.permute.xlu1 %398 }
 0x1a0   :  { %v1659_v10 = vpop.eup %1658  ;;  %1666 = vpow2.f32 %v415_v35  ;;  %v412_v48 = vsub.f32 %v1866_v62, %v399_v45 }
 0x1a1   :  { %v183_v49 = vsel %vm39_vm4, %v1659_v10, 0.0 }
 0x1a2   :  { %v417_v18 = vmul.f32 1.442695, %v412_v48  ;;  %184 = vadd.xlane.f32.xlu1 %v183_v49 }
 0x1a3   :  { %v404_v55 = vpop.permute.xlu1 %403 }
 0x1a4   :  { %v1661_v23 = vpop.eup %1660  ;;  %1668 = vpow2.f32 %v417_v18  ;;  %v413_v39 = vsub.f32 %v1878_v14, %v404_v55 }
 0x1a5   :  { %v186_v47 = vsel %vm39_vm4, %v1661_v23, 0.0  ;;  %v232_v63 = vpack.c.bf16 %v1661_v23, %v1659_v10 }
 0x1a6   :  { %v419_v37 = vmul.f32 1.442695, %v413_v39  ;;  %187 = vadd.xlane.f32.xlu0 %v186_v47  ;;  %v657_v6 = vpop.permute.xlu0 %656 }
 0x1a7   :  { %v670_v24 = vsub.f32 %v1894_v30, %v657_v6  ;;  %1553 = vmatprep.mubr.msk.bf16.mxu0 %vm39_vm4, %v232_v63  ;;  %v409_v62 = vpop.permute.xlu1 %408 }
 0x1a8   :  { %v1663_v22 = vpop.eup %1662  ;;  %1670 = vpow2.f32 %v419_v37  ;;  %v414_v26 = vsub.f32 %v1881_v17, %v409_v62 }
 0x1a9   :  { %v189_v19 = vsel %vm39_vm4, %v1663_v22, 0.0  ;;  %v675_v33 = vmul.f32 1.442695, %v670_v24 }
 0x1aa   :  { %v421_v36 = vmul.f32 1.442695, %v414_v26  ;;  %190 = vadd.xlane.f32.xlu0 %v189_v19  ;;  %v485_v14 = vpop.permute.xlu0 %484 }
 0x1ab   :  { %1557 = vmatprep.subr.bf16.mxu1 %v485_v14 }
 0x1ac   :  { %v1665_v35 = vpop.eup %1664  ;;  %1672 = vpow2.f32 %v421_v36  ;;  %v652_v45 = vpop.permute.xlu1 %651  ;;  %1558 = vmatpush3.bf16.msra.mxu1 %v485_v14 }
 0x1ad   :  { %v1667_v10 = vpop.eup %1666  ;;  %v669_v30 = vsub.f32 %v1891_v29, %v652_v45  ;;  %v192_v48 = vsel %vm39_vm4, %v1665_v35, 0.0  ;;  %v233_v49 = vpack.c.bf16 %v1665_v35, %v1663_v22  ;;  %1674 = vpow2.f32 %v675_v33 }
 0x1ae   :  { %193 = vadd.xlane.f32.xlu1 %v192_v48  ;;  %v431_v17 = vsel %vm39_vm4, %v1667_v10, 0.0  ;;  %v910_v29 = vpop.permute.xlu0 %909 }
 0x1af   :  { %v673_v18 = vmul.f32 1.442695, %v669_v30  ;;  %432 = vadd.xlane.f32.xlu0 %v431_v17  ;;  %1554 = vmatmul.mubr.msk.bf16.vlgmr.msra.gmra.mxu0 %vm39_vm4, %v233_v49  ;;  %v927_v19 = vsub.f32 %v1906_v52, %v910_v29 }
 0x1b0   :  { %v662_v55 = vpop.permute.xlu1 %661 }
 0x1b1   :  { %v1669_v23 = vpop.eup %1668  ;;  %1676 = vpow2.f32 %v673_v18  ;;  %v671_v39 = vsub.f32 %v1901_v44, %v662_v55 }
 0x1b2   :  { %v434_v47 = vsel %vm39_vm4, %v1669_v23, 0.0  ;;  %v480_v63 = vpack.c.bf16 %v1669_v23, %v1667_v10  ;;  %v925_v36 = vpop.permute.xlu0 %924  ;;  %v931_v10 = vmul.f32 1.442695, %v927_v19 }
 0x1b3   :  { %v677_v37 = vmul.f32 1.442695, %v671_v39  ;;  %435 = vadd.xlane.f32.xlu1 %v434_v47 }
 0x1b4   :  { %v667_v6 = vpop.permute.xlu1 %666  ;;  %1561 = vmatprep.mubr.msk.bf16.mxu1 %vm39_vm4, %v480_v63 }
 0x1b5   :  { %v1671_v24 = vpop.eup %1670  ;;  %1678 = vpow2.f32 %v677_v37  ;;  %v672_v62 = vsub.f32 %v1909_v54, %v667_v6  ;;  %v930_v54 = vsub.f32 %v1927_v4, %v925_v36 }
 0x1b6   :  { %v437_v22 = vsel %vm39_vm4, %v1671_v24, 0.0  ;;  %v741_v37 = vpop.permute.xlu0 %740 }
 0x1b7   :  { %v679_v26 = vmul.f32 1.442695, %v672_v62  ;;  %438 = vadd.xlane.f32.xlu0 %v437_v22  ;;  %v937_v23 = vmul.f32 1.442695, %v930_v54  ;;  %v641_v62 = vmul.f32 1.442695, %v637_v59 }
 0x1b8   :  { %v483_v44 = vpop.permute.xlu1 %482  ;;  %v647_v54 = vmul.f32 1.442695, %v640_v8  ;;  %v135_v8 = vmul.f32 1.442695, %v2397_v1 }
 0x1b9   :  { %v1673_v33 = vpop.eup %1672  ;;  %1680 = vpow2.f32 %v679_v26  ;;  %1559 = vmatprep.subr.bf16.mxu1 %v483_v44 }
 0x1ba   :  { %1560 = vmatpush3.bf16.msra.mxu1 %v483_v44  ;;  %v440_v14 = vsel %vm39_vm4, %v1673_v33, 0.0  ;;  %v481_v35 = vpack.c.bf16 %v1673_v33, %v1671_v24  ;;  %v1675_v45 = vpop.eup %1674  ;;  %1682 = vpow2.f32 %v931_v10  ;;  %v643_v24 = vmul.f32 1.442695, %v638_v61  ;;  %v999_v26 = vpop.permute.xlu0 %998 }
 0x1bb   :  { %441 = vadd.xlane.f32.xlu1 %v440_v14  ;;  %v692_v49 = vsel %vm39_vm4, %v1675_v45, 0.0 }
 0x1bc   :  { %v915_v30 = vpop.permute.xlu1 %914 }
 0x1bd   :  { %v928_v48 = vsub.f32 %v1924_v3, %v915_v30  ;;  %1562 = vmatmul.mubr.msk.bf16.vlgmr.msra.gmra.mxu1 %vm39_vm4, %v481_v35 }
 0x1be   :  { %v1677_v52 = vpop.eup %1676 }
 0x1bf   :  { %v933_v17 = vmul.f32 1.442695, %v928_v48  ;;  %693 = vadd.xlane.f32.xlu1 %v692_v49  ;;  %v689_v18 = vsel %vm39_vm4, %v1677_v52, 0.0  ;;  %v738_v55 = vpack.c.bf16 %v1675_v45, %v1677_v52  ;;  %v645_v45 = vmul.f32 1.442695, %v639_v12  ;;  %v175_v49 = vld [vmem:[#allocation3] sm:$0xff] }
 0x1c0   :  { %v920_v39 = vpop.permute.xlu1 %919  ;;  %690 = vadd.xlane.f32.xlu0 %v689_v18  ;;  %v901_v48 = vmul.f32 1.442695, %v896_v50  ;;  %v903_v12 = vmul.f32 1.442695, %v2396_v9 }
 0x1c1   :  { %1684 = vpow2.f32 %v933_v17  ;;  %v929_v4 = vsub.f32 %v1934_v11, %v920_v39  ;;  %1569 = vmatprep.mubr.msk.bf16.mxu0 %vm39_vm4, %v738_v55  ;;  %v176_v55 = vld [vmem:[#allocation3 + $0x8] sm:$0xff] }
 0x1c2   :  { %v1679_v3 = vpop.eup %1678  ;;  %1686 = vpow2.f32 %v937_v23  ;;  %v180_v39 = vmul.f32 %v2123_v16, %v176_v55 }
 0x1c3   :  { %v935_v47 = vmul.f32 1.442695, %v929_v4  ;;  %v695_v63 = vsel %vm39_vm4, %v1679_v3, 0.0 }
 0x1c4   :  { %v743_v29 = vpop.permute.xlu1 %742  ;;  %696 = vadd.xlane.f32.xlu0 %v695_v63 }
 0x1c5   :  { %1688 = vpow2.f32 %v935_v47  ;;  %1565 = vmatprep.subr.bf16.mxu0 %v743_v29 }
 0x1c6   :  { %v1681_v6 = vpop.eup %1680  ;;  %1566 = vmatpush3.bf16.msra.mxu0 %v743_v29  ;;  %1690 = vpow2.f32 %v643_v24  ;;  %v178_v29 = vld [vmem:[#allocation3 + $0x18] sm:$0xff] }
 0x1c7   :  { %v698_v11 = vsel %vm39_vm4, %v1681_v6, 0.0  ;;  %1567 = vmatprep.subr.bf16.mxu0 %v741_v37  ;;  %v739_v19 = vpack.c.bf16 %v1681_v6, %v1679_v3  ;;  %1692 = vpow2.f32 %v641_v62  ;;  %v1683_v44 = vpop.eup %1682  ;;  %v177_v3 = vld [vmem:[#allocation3 + $0x10] sm:$0xff]  ;;  %v182_v24 = vmul.f32 %v2133_v34, %v178_v29 }
 0x1c8   :  { %v1001_v22 = vpop.permute.xlu1 %1000  ;;  %699 = vadd.xlane.f32.xlu1 %v698_v11  ;;  %v947_v36 = vsel %vm39_vm4, %v1683_v44, 0.0  ;;  %1694 = vpow2.f32 %v645_v45 }
 0x1c9   :  { %1573 = vmatprep.subr.bf16.mxu1 %v1001_v22  ;;  %1696 = vpow2.f32 %v647_v54 }
 0x1ca   :  { %1568 = vmatpush3.bf16.msra.mxu0 %v741_v37  ;;  %1574 = vmatpush3.bf16.msra.mxu1 %v1001_v22  ;;  %1698 = vpow2.f32 %v901_v48 }
 0x1cb   :  { %1575 = vmatprep.subr.bf16.mxu1 %v999_v26  ;;  %1700 = vpow2.f32 %v899_v2 }
 0x1cc   :  { %v2208_v30 = vpop.permute.xlu1 %215  ;;  %1702 = vpow2.f32 %v903_v12 }
 0x1cd   :  { %1570 = vmatmul.mubr.msk.bf16.vlgmr.msra.gmra.mxu0 %vm39_vm4, %v739_v19  ;;  %1704 = vpow2.f32 %v135_v8 }
 0x1ce   :  { %v1685_v56 = vpop.eup %1684  ;;  %1576 = vmatpush3.bf16.msra.mxu1 %v999_v26 }
 0x1cf   :  { %v996_v58 = vpack.c.bf16 %v1685_v56, %v1683_v44  ;;  %v1687_v61 = vpop.eup %1686  ;;  %v950_v14 = vsel %vm39_vm4, %v1685_v56, 0.0 }
 0x1d0   :  { %v956_v10 = vsel %vm39_vm4, %v1687_v61, 0.0  ;;  %v2219_v27 = vpop.permute.xlu1 %220 }
 0x1d1   :  { %1577 = vmatprep.mubr.msk.bf16.mxu1 %vm39_vm4, %v996_v58 }
 0x1d2   :  { %v1689_v51 = vpop.eup %1688 }
 0x1d3   :  { %v997_v53 = vpack.c.bf16 %v1687_v61, %v1689_v51  ;;  %v2192_v59 = vpop.eup %1690  ;;  %v953_v35 = vsel %vm39_vm4, %v1689_v51, 0.0 }
 0x1d4   :  { %v2194_v33 = vpop.eup %1692  ;;  %v2224_v25 = vpop.permute.xlu1 %225 }
 0x1d5   :  { %1578 = vmatmul.mubr.msk.bf16.vlgmr.msra.gmra.mxu1 %vm39_vm4, %v997_v53  ;;  %v2226_v28 = vpop.eup %1694 }
 0x1d6   :  { %v2228_v20 = vpop.eup %1696 }
 0x1d7   :  { %v2234_v32 = vpop.eup %1698 }
 0x1d8   :  { %v2237_v46 = vpop.eup %1700 }
 0x1d9   :  { %721 = vperm.xlu1 %1628, %v2192_v59   ;;  %v2232_v21 = vpop.permute.xlu1 %458  ;;  %v2242_v15 = vpop.eup %1702 }
 0x1da   :  { %716 = vperm.xlu0 %1627, %v2194_v33   ;;  %v1705_v60 = vpop.eup %1704 }
 0x1db   :  { %v179_v17 = vmul.f32 %v1705_v60, %v175_v49 }
 0x1dd   :  { %v2244_v50 = vpop.permute.xlu1 %463 }
 0x1e1   :  { %v2249_v13 = vpop.permute.xlu1 %468 }
 0x1e5   :  { %v2251_v52 = vpop.permute.xlu1 %473 }
 0x1f9   :  { %948 = vadd.xlane.f32.xlu0 %v947_v36 }
 0x1fd   :  { %951 = vadd.xlane.f32.xlu1 %v950_v14  ;;  %954 = vadd.xlane.f32.xlu0 %v953_v35 }
 0x201   :  { %957 = vadd.xlane.f32.xlu1 %v956_v10 }
 0x212   :  { %726 = vperm.xlu1 %1628, %v2226_v28  }
 0x213   :  { %731 = vperm.xlu0 %1627, %v2228_v20  }
 0x216   :  { %1631 = vset.pattern.permute.xlu1 %v1751_v7 }
 0x217   :  { %1629 = vset.pattern.permute.xlu0 %v1751_v7  ;;  %979 = vperm.xlu1 %1631, %v2234_v32  }
 0x218   :  { %974 = vperm.xlu0 %1629, %v2237_v46  }
 0x21b   :  { %984 = vperm.xlu1 %1631, %v2242_v15  }
 0x21c   :  { %1630 = vset.pattern.permute.xlu0 %v1748_v0 }
 0x21d   :  { %210 = vperm.xlu0 %1630, %v1705_v60  }
 0x21f   :  { %1632 = vset.pattern.permute.xlu1 %v1748_v0  ;;  %v181_v0 = vmul.f32 %v2128_v31, %v177_v3 }
 0x22b   :  { %v185_v18 = vpop.xlane.xlu1 %184 }
 0x22c   :  { %v195_v23 = vadd.f32 %v185_v18, %v179_v17  ;;  %v207_v18 = vld [vmem:[#allocation4 + $0x18] sm:$0xff] }
 0x22e   :  { %200 = vst.msk [vmem:[#allocation3] sm:$0xff] %vm199_vm6, %v195_v23  ;;  %v205_v23 = vld [vmem:[#allocation4 + $0x8] sm:$0xff] }
 0x22f   :  { %v188_v4 = vpop.xlane.xlu0 %187  ;;  %v229_v3 = vmul.f32 %v2208_v30, %v205_v23 }
 0x230   :  { %v196_v47 = vadd.f32 %v188_v4, %v180_v39  ;;  %v231_v4 = vmul.f32 %v2224_v25, %v207_v18 }
 0x232   :  { %201 = vst.msk [vmem:[#allocation3 + $0x8] sm:$0xff] %vm199_vm6, %v196_v47 }
 0x233   :  { %v191_v63 = vpop.xlane.xlu0 %190 }
 0x234   :  { %v197_v37 = vadd.f32 %v191_v63, %v181_v0 }
 0x235   :  { %v423_v6 = vld [vmem:[#allocation3] sm:$0xff] }
 0x236   :  { %202 = vst.msk [vmem:[#allocation3 + $0x10] sm:$0xff] %vm199_vm6, %v197_v37  ;;  %v427_v11 = vmul.f32 %v2136_v40, %v423_v6 }
 0x237   :  { %v194_v62 = vpop.xlane.xlu1 %193 }
 0x238   :  { %v198_v22 = vadd.f32 %v194_v62, %v182_v24  ;;  %v433_v16 = vpop.xlane.xlu0 %432 }
 0x239   :  { %v443_v26 = vadd.f32 %v433_v16, %v427_v11  ;;  %v424_v19 = vld [vmem:[#allocation3 + $0x8] sm:$0xff] }
 0x23a   :  { %203 = vst.msk [vmem:[#allocation3 + $0x18] sm:$0xff] %vm199_vm6, %v198_v22  ;;  %v428_v44 = vmul.f32 %v2140_v43, %v424_v19 }
 0x23b   :  { %448 = vst.msk [vmem:[#allocation3] sm:$0xff] %vm447_vm7, %v443_v26 }
 0x23c   :  { %v436_v31 = vpop.xlane.xlu1 %435 }
 0x23d   :  { %v444_v56 = vadd.f32 %v436_v31, %v428_v44  ;;  %v425_v58 = vld [vmem:[#allocation3 + $0x10] sm:$0xff] }
 0x23e   :  { %v429_v61 = vmul.f32 %v2143_v38, %v425_v58 }
 0x23f   :  { %449 = vst.msk [vmem:[#allocation3 + $0x8] sm:$0xff] %vm447_vm7, %v444_v56 }
 0x240   :  { %v439_v34 = vpop.xlane.xlu0 %438 }
 0x241   :  { %v445_v40 = vadd.f32 %v439_v34, %v429_v61  ;;  %v426_v51 = vld [vmem:[#allocation3 + $0x18] sm:$0xff] }
 0x242   :  { %v430_v53 = vmul.f32 %v2146_v41, %v426_v51  ;;  %v681_v35 = vld [vmem:[#allocation3] sm:$0xff] }
 0x243   :  { %450 = vst.msk [vmem:[#allocation3 + $0x10] sm:$0xff] %vm447_vm7, %v445_v40  ;;  %v685_v38 = vmul.f32 %v2194_v33, %v681_v35  ;;  %v206_v33 = vld [vmem:[#allocation4 + $0x10] sm:$0xff]  ;;  %v204_v35 = vld [vmem:[#allocation4] sm:$0xff] }
 0x244   :  { %v442_v36 = vpop.xlane.xlu1 %441  ;;  %v230_v17 = vmul.f32 %v2219_v27, %v206_v33  ;;  %v2398_v27 = vsub.f32 %v2077_v42, %v2084_v57 }
 0x245   :  { %v446_v14 = vadd.f32 %v442_v36, %v430_v53 }
 0x246   :  { %v682_v43 = vld [vmem:[#allocation3 + $0x8] sm:$0xff]  ;;  %v905_v29 = vmul.f32 1.442695, %v2398_v27 }
 0x247   :  { %451 = vst.msk [vmem:[#allocation3 + $0x18] sm:$0xff] %vm447_vm7, %v446_v14  ;;  %v686_v45 = vmul.f32 %v2192_v59, %v682_v43 }
 0x248   :  { %v694_v10 = vpop.xlane.xlu1 %693  ;;  %1706 = vpow2.f32 %v905_v29 }
 0x249   :  { %v702_v54 = vadd.f32 %v694_v10, %v686_v45  ;;  %v691_v48 = vpop.xlane.xlu0 %690 }
 0x24a   :  { %v701_v2 = vadd.f32 %v691_v48, %v685_v38  ;;  %v683_v9 = vld [vmem:[#allocation3 + $0x10] sm:$0xff] }
 0x24b   :  { %707 = vst.msk [vmem:[#allocation3 + $0x8] sm:$0xff] %vm705_vm8, %v702_v54  ;;  %v687_v41 = vmul.f32 %v2226_v28, %v683_v9 }
 0x24c   :  { %706 = vst.msk [vmem:[#allocation3] sm:$0xff] %vm705_vm8, %v701_v2 }
 0x24d   :  { %v697_v12 = vpop.xlane.xlu0 %696 }
 0x24e   :  { %v703_v1 = vadd.f32 %v697_v12, %v687_v41  ;;  %v684_v8 = vld [vmem:[#allocation3 + $0x18] sm:$0xff] }
 0x24f   :  { %v688_v60 = vmul.f32 %v2228_v20, %v684_v8 }
 0x250   :  { %708 = vst.msk [vmem:[#allocation3 + $0x10] sm:$0xff] %vm705_vm8, %v703_v1 }
 0x251   :  { %v700_v59 = vpop.xlane.xlu1 %699 }
 0x252   :  { %v704_v49 = vadd.f32 %v700_v59, %v688_v60  ;;  %v940_v11 = vld [vmem:[#allocation3 + $0x8] sm:$0xff]  ;;  %v2399_v59 = vmov 2  }
 0x253   :  { %v939_v25 = vld [vmem:[#allocation3] sm:$0xff]  ;;  %v944_v16 = vmul.f32 %v2234_v32, %v940_v11 }
 0x254   :  { %709 = vst.msk [vmem:[#allocation3 + $0x18] sm:$0xff] %vm705_vm8, %v704_v49  ;;  %v943_v6 = vmul.f32 %v2237_v46, %v939_v25  ;;  %v1643_v49 = vld [vmem:[%s2390_s4] sm:$0xff]  }
 0x255   :  { %v2285_v37 = vpop.permute.xlu0 %716  ;;  %v2288_v24 = vpop.permute.xlu1 %721 }
 0x256   :  { %v1707_v56 = vpop.eup %1706 }
 0x257   :  { %v941_v62 = vld [vmem:[#allocation3 + $0x10] sm:$0xff] }
 0x258   :  { %v945_v42 = vmul.f32 %v2242_v15, %v941_v62 }
 0x25b   :  { %v942_v19 = vld [vmem:[#allocation3 + $0x18] sm:$0xff] }
 0x25c   :  { %v946_v46 = vmul.f32 %v1707_v56, %v942_v19 }
 0x26f   :  { %v1555_v55 = vpop.f32.mrf.mxu0 }
 0x270   :  { %v303_v28 = vadd.f32 %v1555_v55, %v230_v17 }
 0x271   :  { %v286_v39 = vpop.f32.mrf.mxu0 }
 0x272   :  { %308 = vst.msk [vmem:[#allocation4 + $0x10] sm:$0xff] %vm305_vm10, %v303_v28 }
 0x273   :  { %v1556_v20 = vpop.f32.mrf.mxu0 }
 0x274   :  { %v304_v47 = vadd.f32 %v1556_v20, %v231_v4 }
 0x275   :  { %v289_v0 = vpop.f32.mrf.mxu0 }
 0x276   :  { %309 = vst.msk [vmem:[#allocation4 + $0x18] sm:$0xff] %vm305_vm10, %v304_v47  ;;  %v302_v63 = vadd.f32 %v289_v0, %v229_v3 }
 0x278   :  { %307 = vst.msk [vmem:[#allocation4 + $0x8] sm:$0xff] %vm305_vm10, %v302_v63 }
 0x27d   :  { %v1563_v15 = vpop.f32.mrf.mxu1  ;;  %v455_v47 = vld [vmem:[#allocation4 + $0x18] sm:$0xff] }
 0x27e   :  { %v479_v27 = vmul.f32 %v2251_v52, %v455_v47 }
 0x27f   :  { %v528_v53 = vpop.f32.mrf.mxu1 }
 0x281   :  { %v1564_v43 = vpop.f32.mrf.mxu1 }
 0x282   :  { %v949_v30 = vpop.xlane.xlu0 %948 }
 0x283   :  { %v959_v22 = vadd.f32 %v949_v30, %v943_v6  ;;  %v531_v48 = vpop.f32.mrf.mxu1  ;;  %v453_v30 = vld [vmem:[#allocation4 + $0x8] sm:$0xff] }
 0x285   :  { %964 = vst.msk [vmem:[#allocation3] sm:$0xff] %vm963_vm9, %v959_v22 }
 0x286   :  { %v952_v57 = vpop.xlane.xlu1 %951  ;;  %v955_v26 = vpop.xlane.xlu0 %954 }
 0x287   :  { %v960_v44 = vadd.f32 %v952_v57, %v944_v16  ;;  %v961_v31 = vadd.f32 %v955_v26, %v945_v42 }
 0x289   :  { %965 = vst.msk [vmem:[#allocation3 + $0x8] sm:$0xff] %vm963_vm9, %v960_v44  ;;  %966 = vst.msk [vmem:[#allocation3 + $0x10] sm:$0xff] %vm963_vm9, %v961_v31 }
 0x28a   :  { %v958_v58 = vpop.xlane.xlu1 %957 }
 0x28b   :  { %v962_v61 = vadd.f32 %v958_v58, %v946_v46 }
 0x28c   :  { %v1095_v34 = vld [vmem:[#allocation3] sm:$0xff] }
 0x28d   :  { %967 = vst.msk [vmem:[#allocation3 + $0x18] sm:$0xff] %vm963_vm9, %v962_v61  ;;  %1101 = vperm.xlu1 %1632, %v1095_v34   ;;  %v1571_v45 = vpop.f32.mrf.mxu0 }
 0x28e   :  { %v2296_v32 = vpop.permute.xlu0 %731  ;;  %v727_v33 = vpop.permute.xlu1 %726 }
 0x28f   :  { %v786_v2 = vpop.f32.mrf.mxu0 }
 0x290   :  { %v1096_v40 = vld [vmem:[#allocation3 + $0x8] sm:$0xff]  ;;  %v1097_v51 = vld [vmem:[#allocation3 + $0x10] sm:$0xff] }
 0x291   :  { %1106 = vperm.xlu0 %1630, %v1096_v40   ;;  %1111 = vperm.xlu1 %1632, %v1097_v51   ;;  %v1572_v9 = vpop.f32.mrf.mxu0 }
 0x292   :  { %v2317_v17 = vpop.permute.xlu1 %979 }
 0x293   :  { %v2298_v36 = vpop.permute.xlu0 %974  ;;  %v789_v12 = vpop.f32.mrf.mxu0 }
 0x294   :  { %v1098_v14 = vld [vmem:[#allocation3 + $0x18] sm:$0xff] }
 0x295   :  { %551 = vrot.lane.b32.xlu0 %v1563_v15, %s1758_s22  ;;  %1116 = vperm.xlu1 %1632, %v1098_v14   ;;  %v1579_v41 = vpop.f32.mrf.mxu1 }
 0x296   :  { %1633 = vset.pattern.permute.xlu0 %v1751_v7  ;;  %v985_v18 = vpop.permute.xlu1 %984 }
 0x297   :  { %v1044_v1 = vpop.f32.mrf.mxu1 }
 0x298   :  { %v211_v10 = vpop.permute.xlu0 %210 }
 0x299   :  { %v228_v38 = vmul.f32 %v211_v10, %v204_v35  ;;  %547 = vrot.lane.b32.xlu0 %v528_v53, %s1758_s22  ;;  %553 = vrot.lane.b32.xlu1 %v1564_v43, %s1758_s22  ;;  %v1580_v8 = vpop.f32.mrf.mxu1 }
 0x29a   :  { %1634 = vset.pattern.permute.xlu1 %v1749_v5 }
 0x29b   :  { %v301_v54 = vadd.f32 %v286_v39, %v228_v38  ;;  %v1047_v60 = vpop.f32.mrf.mxu1  ;;  %v454_v39 = vld [vmem:[#allocation4 + $0x10] sm:$0xff] }
 0x29c   :  { %v478_v4 = vmul.f32 %v2249_v13, %v454_v39  ;;  %v477_v13 = vmul.f32 %v2244_v50, %v453_v30 }
 0x29d   :  { %306 = vst.msk [vmem:[#allocation4] sm:$0xff] %vm305_vm10, %v301_v54  ;;  %989 = vperm.xlu0 %1633, %v1707_v56   ;;  %549 = vrot.lane.b32.xlu1 %v531_v48, %s1758_s22 }
 0x2a1   :  { %811 = vrot.lane.b32.xlu0 %v1572_v9, %s1759_s23  ;;  %1141 = vperm.xlu1 %1634, %v1095_v34  }
 0x2a2   :  { %1635 = vset.pattern.permute.xlu0 %v1749_v5  ;;  %v1642_v5 = vld [vmem:[%s2390_s4 + $0x8] sm:$0xff]  }
 0x2a3   :  { %1581 = vmatprep.subr.bf16.mxu0 %v1642_v5 }
 0x2a4   :  { %1582 = vmatpush3.bf16.msra.mxu0 %v1642_v5  ;;  %v452_v0 = vld [vmem:[#allocation4] sm:$0xff] }
 0x2a5   :  { %807 = vrot.lane.b32.xlu0 %v789_v12, %s1759_s23  ;;  %809 = vrot.lane.b32.xlu1 %v1571_v45, %s1759_s23  ;;  %v476_v29 = vmul.f32 %v2232_v21, %v452_v0 }
 0x2a6   :  { %1583 = vmatprep.subr.bf16.mxu0 %v1643_v49 }
 0x2a8   :  { %1584 = vmatpush3.bf16.msra.mxu0 %v1643_v49 }
 0x2a9   :  { %1069 = vrot.lane.b32.xlu0 %v1580_v8, %s1760_s24  ;;  %805 = vrot.lane.b32.xlu1 %v786_v2, %s1759_s23 }
 0x2ad   :  { %1065 = vrot.lane.b32.xlu0 %v1047_v60, %s1760_s24  ;;  %1067 = vrot.lane.b32.xlu1 %v1579_v41, %s1760_s24 }
 0x2b1   :  { %1146 = vperm.xlu0 %1635, %v1096_v40   ;;  %1063 = vrot.lane.b32.xlu1 %v1044_v1, %s1760_s24 }
 0x2b5   :  { %1636 = vset.pattern.permute.xlu0 %v2399_v59  ;;  %1151 = vperm.xlu1 %1634, %v1097_v51  }
 0x2b6   :  { %1181 = vperm.xlu0 %1636, %v1095_v34  }
 0x2b9   :  { %1156 = vperm.xlu1 %1634, %v1098_v14  }
 0x2ba   :  { %1196 = vperm.xlu0 %1636, %v1098_v14  }
 0x2bd   :  { %1637 = vset.pattern.permute.xlu1 %v2399_v59 }
 0x2be   :  { %1639 = vset.pattern.permute.xlu0 %v1751_v7  ;;  %1186 = vperm.xlu1 %1637, %v1096_v40  }
 0x2bf   :  { %1226 = vperm.xlu0 %1639, %v1096_v40  }
 0x2c2   :  { %1191 = vperm.xlu1 %1637, %v1097_v51  }
 0x2c6   :  { %1638 = vset.pattern.permute.xlu1 %v1751_v7  ;;  %v1352_v7 = vld [vmem:[%s2391_s5] sm:$0xf] }
 0x2c7   :  { %1221 = vperm.xlu1 %1638, %v1095_v34   ;;  %1589 = vmatprep.subr.msk.mxu1 %vm1366_vm11, %v1352_v7 }
 0x2c8   :  { %1590 = vmatpush3.msk.msra.mxu1 %vm1366_vm11, %v1352_v7 }
 0x2cb   :  { %1231 = vperm.xlu1 %1638, %v1097_v51  }
 0x2cf   :  { %1236 = vperm.xlu1 %1638, %v1098_v14  }
 0x308   :  { %v1102_v55 = vpop.permute.xlu1 %1101 }
 0x30c   :  { %v1112_v28 = vpop.permute.xlu1 %1111  ;;  %v1107_v23 = vpop.permute.xlu0 %1106 }
 0x30d   :  { %1708 = vrcp.f32 %v1112_v28 }
 0x310   :  { %v1117_v20 = vpop.permute.xlu1 %1116  ;;  %v552_v3 = vpop.permute.xlu0 %551 }
 0x311   :  { %v561_v63 = vadd.f32 %v552_v3, %v478_v4  ;;  %1710 = vrcp.f32 %v1117_v20 }
 0x312   :  { %1712 = vrcp.f32 %v1102_v55 }
 0x313   :  { %566 = vst.msk [vmem:[#allocation4 + $0x10] sm:$0xff] %vm563_vm12, %v561_v63  ;;  %1714 = vrcp.f32 %v1107_v23 }
 0x314   :  { %v554_v25 = vpop.permute.xlu1 %553  ;;  %v548_v6 = vpop.permute.xlu0 %547 }
 0x315   :  { %v562_v11 = vadd.f32 %v554_v25, %v479_v27  ;;  %v559_v62 = vadd.f32 %v548_v6, %v476_v29 }
 0x317   :  { %567 = vst.msk [vmem:[#allocation4 + $0x18] sm:$0xff] %vm563_vm12, %v562_v11  ;;  %564 = vst.msk [vmem:[#allocation4] sm:$0xff] %vm563_vm12, %v559_v62 }
 0x318   :  { %v550_v22 = vpop.permute.xlu1 %549  ;;  %v990_v16 = vpop.permute.xlu0 %989 }
 0x319   :  { %v560_v42 = vadd.f32 %v550_v22, %v477_v13 }
 0x31a   :  { %v712_v26 = vld [vmem:[#allocation4 + $0x10] sm:$0xff]  ;;  %v1709_v5 = vpop.eup %1708 }
 0x31b   :  { %565 = vst.msk [vmem:[#allocation4 + $0x8] sm:$0xff] %vm563_vm12, %v560_v42  ;;  %v736_v44 = vmul.f32 %v727_v33, %v712_v26 }
 0x31c   :  { %v1142_v57 = vpop.permute.xlu1 %1141  ;;  %v812_v52 = vpop.permute.xlu0 %811 }
 0x31e   :  { %v713_v21 = vld [vmem:[#allocation4 + $0x18] sm:$0xff]  ;;  %v710_v46 = vld [vmem:[#allocation4] sm:$0xff]  ;;  %v1711_v49 = vpop.eup %1710 }
 0x31f   :  { %v737_v19 = vmul.f32 %v2296_v32, %v713_v21  ;;  %v734_v15 = vmul.f32 %v2285_v37, %v710_v46 }
 0x320   :  { %v810_v31 = vpop.permute.xlu1 %809  ;;  %v808_v56 = vpop.permute.xlu0 %807 }
 0x321   :  { %v820_v58 = vadd.f32 %v812_v52, %v737_v19  ;;  %v819_v61 = vadd.f32 %v810_v31, %v736_v44 }
 0x322   :  { %v711_v34 = vld [vmem:[#allocation4 + $0x8] sm:$0xff] }
 0x323   :  { %825 = vst.msk [vmem:[#allocation4 + $0x18] sm:$0xff] %vm821_vm13, %v820_v58  ;;  %824 = vst.msk [vmem:[#allocation4 + $0x10] sm:$0xff] %vm821_vm13, %v819_v61  ;;  %v735_v50 = vmul.f32 %v2288_v24, %v711_v34 }
 0x324   :  { %v806_v40 = vpop.permute.xlu1 %805  ;;  %v1070_v51 = vpop.permute.xlu0 %1069 }
 0x325   :  { %v818_v53 = vadd.f32 %v808_v56, %v735_v50  ;;  %v817_v32 = vadd.f32 %v806_v40, %v734_v15 }
 0x327   :  { %823 = vst.msk [vmem:[#allocation4 + $0x8] sm:$0xff] %vm821_vm13, %v818_v53  ;;  %822 = vst.msk [vmem:[#allocation4] sm:$0xff] %vm821_vm13, %v817_v32 }
 0x328   :  { %v1068_v14 = vpop.permute.xlu1 %1067  ;;  %v1066_v45 = vpop.permute.xlu0 %1065 }
 0x32a   :  { %v971_v35 = vld [vmem:[#allocation4 + $0x18] sm:$0xff]  ;;  %v970_v43 = vld [vmem:[#allocation4 + $0x10] sm:$0xff] }
 0x32b   :  { %v995_v10 = vmul.f32 %v990_v16, %v971_v35  ;;  %v994_v38 = vmul.f32 %v985_v18, %v970_v43 }
 0x32c   :  { %v1064_v24 = vpop.permute.xlu1 %1063  ;;  %v1147_v12 = vpop.permute.xlu0 %1146 }
 0x32d   :  { %v1078_v37 = vadd.f32 %v1070_v51, %v995_v10  ;;  %v1077_v54 = vadd.f32 %v1068_v14, %v994_v38 }
 0x32e   :  { %v969_v48 = vld [vmem:[#allocation4 + $0x8] sm:$0xff]  ;;  %v968_v2 = vld [vmem:[#allocation4] sm:$0xff] }
 0x32f   :  { %1083 = vst.msk [vmem:[#allocation4 + $0x18] sm:$0xff] %vm1079_vm14, %v1078_v37  ;;  %1082 = vst.msk [vmem:[#allocation4 + $0x10] sm:$0xff] %vm1079_vm14, %v1077_v54  ;;  %v993_v9 = vmul.f32 %v2317_v17, %v969_v48  ;;  %v992_v41 = vmul.f32 %v2298_v36, %v968_v2  ;;  %v1713_v36 = vpop.eup %1712 }
 0x330   :  { %v1152_v1 = vpop.permute.xlu1 %1151  ;;  %v1715_v23 = vpop.eup %1714 }
 0x331   :  { %v1076_v8 = vadd.f32 %v1066_v45, %v993_v9  ;;  %v1075_v60 = vadd.f32 %v1064_v24, %v992_v41  ;;  %1716 = vrcp.f32 %v1152_v1  ;;  %v1182_v18 = vpop.permute.xlu0 %1181 }
 0x333   :  { %1081 = vst.msk [vmem:[#allocation4 + $0x8] sm:$0xff] %vm1079_vm14, %v1076_v8  ;;  %1080 = vst.msk [vmem:[#allocation4] sm:$0xff] %vm1079_vm14, %v1075_v60 }
 0x334   :  { %v1157_v59 = vpop.permute.xlu1 %1156 }
 0x335   :  { %1718 = vrcp.f32 %v1157_v59  ;;  %v1197_v47 = vpop.permute.xlu0 %1196 }
 0x336   :  { %1720 = vrcp.f32 %v1142_v57  ;;  %v1094_v33 = vld [vmem:[#allocation4 + $0x18] sm:$0xff]  ;;  %v1093_v7 = vld [vmem:[#allocation4 + $0x10] sm:$0xff] }
 0x337   :  { %v1126_v17 = vmul.f32 %v1711_v49, %v1094_v33  ;;  %v1124_v55 = vmul.f32 %v1709_v5, %v1093_v7  ;;  %1722 = vrcp.f32 %v1147_v12 }
 0x339   :  { %1130 = vst.msk [vmem:[#allocation4 + $0x18] sm:$0xff] %vm305_vm10, %v1126_v17  ;;  %1129 = vst.msk [vmem:[#allocation4 + $0x10] sm:$0xff] %vm305_vm10, %v1124_v55  ;;  %v1187_v28 = vpop.permute.xlu1 %1186 }
 0x33a   :  { %v1092_v39 = vld [vmem:[#allocation4 + $0x8] sm:$0xff]  ;;  %v1091_v4 = vld [vmem:[#allocation4] sm:$0xff]  ;;  %v1227_v52 = vpop.permute.xlu0 %1226 }
 0x33b   :  { %v1122_v20 = vmul.f32 %v1715_v23, %v1092_v39  ;;  %v1120_v3 = vmul.f32 %v1713_v36, %v1091_v4 }
 0x33d   :  { %1128 = vst.msk [vmem:[#allocation4 + $0x8] sm:$0xff] %vm305_vm10, %v1122_v20  ;;  %1127 = vst.msk [vmem:[#allocation4] sm:$0xff] %vm305_vm10, %v1120_v3  ;;  %v1192_v0 = vpop.permute.xlu1 %1191 }
 0x33e   :  { %1724 = vrcp.f32 %v1192_v0  ;;  %v1717_v63 = vpop.eup %1716 }
 0x33f   :  { %1726 = vrcp.f32 %v1197_v47 }
 0x340   :  { %v1133_v27 = vld [vmem:[#allocation4 + $0x10] sm:$0xff]  ;;  %1728 = vrcp.f32 %v1182_v18  ;;  %v1134_v6 = vld [vmem:[#allocation4 + $0x18] sm:$0xff] }
 0x341   :  { %v1164_v29 = vmul.f32 %v1717_v63, %v1133_v27  ;;  %1730 = vrcp.f32 %v1187_v28 }
 0x342   :  { %v1719_v25 = vpop.eup %1718  ;;  %v1222_v30 = vpop.permute.xlu1 %1221 }
 0x343   :  { %v1721_v11 = vpop.eup %1720  ;;  %1169 = vst.msk [vmem:[#allocation4 + $0x10] sm:$0xff] %vm563_vm12, %v1164_v29  ;;  %v1166_v62 = vmul.f32 %v1719_v25, %v1134_v6 }
 0x344   :  { %v1723_v13 = vpop.eup %1722  ;;  %v1131_v22 = vld [vmem:[#allocation4] sm:$0xff]  ;;  %v1132_v16 = vld [vmem:[#allocation4 + $0x8] sm:$0xff] }
 0x345   :  { %v1160_v42 = vmul.f32 %v1721_v11, %v1131_v22  ;;  %v1162_v57 = vmul.f32 %v1723_v13, %v1132_v16  ;;  %1170 = vst.msk [vmem:[#allocation4 + $0x18] sm:$0xff] %vm563_vm12, %v1166_v62 }
 0x346   :  { %v1232_v26 = vpop.permute.xlu1 %1231 }
 0x347   :  { %1167 = vst.msk [vmem:[#allocation4] sm:$0xff] %vm563_vm12, %v1160_v42  ;;  %1168 = vst.msk [vmem:[#allocation4 + $0x8] sm:$0xff] %vm563_vm12, %v1162_v57  ;;  %1732 = vrcp.f32 %v1232_v26 }
 0x348   :  { %1734 = vrcp.f32 %v1227_v52 }
 0x349   :  { %1736 = vrcp.f32 %v1222_v30 }
 0x34a   :  { %v1173_v21 = vld [vmem:[#allocation4 + $0x10] sm:$0xff]  ;;  %v1237_v19 = vpop.permute.xlu1 %1236 }
 0x34b   :  { %v1725_v44 = vpop.eup %1724  ;;  %1738 = vrcp.f32 %v1237_v19 }
 0x34c   :  { %v1727_v31 = vpop.eup %1726  ;;  %v1174_v56 = vld [vmem:[#allocation4 + $0x18] sm:$0xff]  ;;  %v1204_v46 = vmul.f32 %v1725_v44, %v1173_v21 }
 0x34d   :  { %v1729_v58 = vpop.eup %1728  ;;  %v1206_v61 = vmul.f32 %v1727_v31, %v1174_v56 }
 0x34e   :  { %v1731_v34 = vpop.eup %1730  ;;  %v1171_v50 = vld [vmem:[#allocation4] sm:$0xff]  ;;  %v1172_v15 = vld [vmem:[#allocation4 + $0x8] sm:$0xff]  ;;  %1209 = vst.msk [vmem:[#allocation4 + $0x10] sm:$0xff] %vm821_vm13, %v1204_v46 }
 0x34f   :  { %v1200_v40 = vmul.f32 %v1729_v58, %v1171_v50  ;;  %1210 = vst.msk [vmem:[#allocation4 + $0x18] sm:$0xff] %vm821_vm13, %v1206_v61  ;;  %v1202_v51 = vmul.f32 %v1731_v34, %v1172_v15 }
 0x351   :  { %1207 = vst.msk [vmem:[#allocation4] sm:$0xff] %vm821_vm13, %v1200_v40  ;;  %1208 = vst.msk [vmem:[#allocation4 + $0x8] sm:$0xff] %vm821_vm13, %v1202_v51 }
 0x354   :  { %v1733_v53 = vpop.eup %1732 }
 0x355   :  { %v1213_v32 = vld [vmem:[#allocation4 + $0x10] sm:$0xff]  ;;  %v1735_v14 = vpop.eup %1734 }
 0x356   :  { %v1244_v35 = vmul.f32 %v1733_v53, %v1213_v32  ;;  %v1737_v43 = vpop.eup %1736  ;;  %v1214_v24 = vld [vmem:[#allocation4 + $0x18] sm:$0xff] }
 0x358   :  { %v1739_v45 = vpop.eup %1738  ;;  %v1212_v10 = vld [vmem:[#allocation4 + $0x8] sm:$0xff]  ;;  %v1211_v38 = vld [vmem:[#allocation4] sm:$0xff]  ;;  %1249 = vst.msk [vmem:[#allocation4 + $0x10] sm:$0xff] %vm1079_vm14, %v1244_v35 }
 0x359   :  { %v1242_v37 = vmul.f32 %v1735_v14, %v1212_v10  ;;  %v1240_v54 = vmul.f32 %v1737_v43, %v1211_v38  ;;  %v1246_v48 = vmul.f32 %v1739_v45, %v1214_v24 }
 0x35b   :  { %1248 = vst.msk [vmem:[#allocation4 + $0x8] sm:$0xff] %vm1079_vm14, %v1242_v37  ;;  %1247 = vst.msk [vmem:[#allocation4] sm:$0xff] %vm1079_vm14, %v1240_v54 }
 0x35c   :  { %1250 = vst.msk [vmem:[#allocation4 + $0x18] sm:$0xff] %vm1079_vm14, %v1246_v48 }
 0x35f   :  { %v1253_v2 = vld [vmem:[#allocation4 + $0x10] sm:$0xff] }
 0x360   :  { %v1261_v9 = vmin.f32 %v1253_v2, 0.0  ;;  %vm1257_vm2 = vcmp.gt.f32.partialorder %v1253_v2, 0.0 }
 0x362   :  { %v1251_v41 = vld [vmem:[#allocation4] sm:$0xff]  ;;  %v1252_v12 = vld [vmem:[#allocation4 + $0x8] sm:$0xff]  ;;  %v1267_v8 = vmul.f32 1.442695, %v1261_v9 }
 0x363   :  { %v1254_v1 = vld [vmem:[#allocation4 + $0x18] sm:$0xff]  ;;  %v1259_v60 = vmin.f32 %v1251_v41, 0.0  ;;  %v1260_v59 = vmin.f32 %v1252_v12, 0.0  ;;  %vm1255_vm15 = vcmp.gt.f32.partialorder %v1251_v41, 0.0  ;;  %vm1256_vm1 = vcmp.gt.f32.partialorder %v1252_v12, 0.0 }
 0x364   :  { %v1262_v5 = vmin.f32 %v1254_v1, 0.0  ;;  %1740 = vpow2.f32 %v1267_v8  ;;  %vm1258_vm3 = vcmp.gt.f32.partialorder %v1254_v1, 0.0 }
 0x365   :  { %v1263_v49 = vmul.f32 1.442695, %v1259_v60  ;;  %v1265_v33 = vmul.f32 1.442695, %v1260_v59 }
 0x366   :  { %v1269_v7 = vmul.f32 1.442695, %v1262_v5 }
 0x367   :  { %1742 = vpow2.f32 %v1263_v49 }
 0x368   :  { %1744 = vpow2.f32 %v1265_v33 }
 0x369   :  { %1746 = vpow2.f32 %v1269_v7 }
 0x371   :  { %v1741_v18 = vpop.eup %1740 }
 0x372   :  { %v1505_v28 = vadd.f32 -1.0, %v1741_v18 }
 0x374   :  { %v1743_v17 = vpop.eup %1742  ;;  %v1277_v0 = vsel %vm1257_vm2, %v1253_v2, %v1505_v28 }
 0x375   :  { %v1745_v55 = vpop.eup %1744  ;;  %v1503_v36 = vadd.f32 -1.0, %v1743_v17 }
 0x376   :  { %v1747_v23 = vpop.eup %1746  ;;  %v1504_v39 = vadd.f32 -1.0, %v1745_v55 }
 0x377   :  { %v1275_v4 = vsel %vm1255_vm15, %v1251_v41, %v1503_v36  ;;  %v1506_v20 = vadd.f32 -1.0, %v1747_v23 }
 0x378   :  { %v1276_v3 = vsel %vm1256_vm1, %v1252_v12, %v1504_v39 }
 0x379   :  { %v1279_v47 = vpack.c.bf16 %v1276_v3, %v1275_v4  ;;  %v1278_v63 = vsel %vm1258_vm3, %v1254_v1, %v1506_v20 }
 0x37a   :  { %v1280_v27 = vpack.c.bf16 %v1278_v63, %v1277_v0 }
 0x37b   :  { %1585 = vmatprep.mubr.msk.bf16.mxu0 %vm39_vm4, %v1279_v47 }
 0x37c   :  { %1586 = vmatmul.mubr.msk.bf16.vlgmr.msra.gmra.mxu0 %vm39_vm4, %v1280_v27  ;;  %vm1476_vm4 = vcmask 15360  }
 0x43c   :  { %v1587_v29 = vpop.f32.mrf.mxu0 }
 0x43d   :  { %v1522_v25 = vpack.c.bf16 %v1587_v29, %v1587_v29 }
 0x43e   :  { %v1337_v6 = vpop.f32.mrf.mxu0 }
 0x43f   :  { %1474 = vst.msk [vmem:[%s2392_s6 + $0x8] sm:$0xf] %vm1471_vm5, %v1522_v25  ;;  %v1520_v30 = vpack.c.bf16 %v1337_v6, %v1337_v6  ;;  %1591 = vmatprep.mubr.msk.f32.mxu1 %vm30_vm0, %v1337_v6 }
 0x440   :  { %v1588_v11 = vpop.f32.mrf.mxu0 }
 0x441   :  { %1472 = vst.msk [vmem:[%s2392_s6] sm:$0xf] %vm1471_vm5, %v1520_v30  ;;  %v1523_v62 = vpack.c.bf16 %v1588_v11, %v1588_v11 }
 0x442   :  { %v1340_v13 = vpop.f32.mrf.mxu0 }
 0x443   :  { %1475 = vst.msk [vmem:[%s2392_s6 + $0xc] sm:$0xf] %vm1471_vm5, %v1523_v62  ;;  %v1521_v22 = vpack.c.bf16 %v1340_v13, %v1340_v13  ;;  %1592 = vmatmul.mubr.msk.f32.vlgmr.msra.gmra.mxu1 %vm30_vm0, %v1340_v13 }
 0x444   :  { %1594 = vmatprep.mubr.msk.f32.mxu1 %vm30_vm0, %v1587_v29 }
 0x445   :  { %1473 = vst.msk [vmem:[%s2392_s6 + $0x4] sm:$0xf] %vm1471_vm5, %v1521_v22 }
 0x447   :  { %1595 = vmatmul.mubr.msk.f32.gmra.mxu1 %vm30_vm0, %v1588_v11 }
 0x503   :  { %v1593_v16 = vpop.f32.mrf.mxu1 }
 0x504   :  { %1478 = vst.msk [vmem:[%s2393_s7 + $0x8] sm:$0xff] %vm1476_vm4, %v1593_v16 }
 0x505   :  { %v1436_v42 = vpop.f32.mrf.mxu1 }
 0x506   :  { %1477 = vst.msk [vmem:[%s2393_s7] sm:$0xff] %vm1476_vm4, %v1436_v42 }
 0x507   :  { %v1596_v57 = vpop.f32.mrf.mxu1 }
 0x508   :  { %1480 = vst.msk [vmem:[%s2393_s7 + $0x18] sm:$0xff] %vm1476_vm4, %v1596_v57 }
 0x509   :  { %v1446_v52 = vpop.f32.mrf.mxu1 }
 0x50a   :  { %1479 = vst.msk [vmem:[%s2393_s7 + $0x10] sm:$0xff] %vm1476_vm4, %v1446_v52 }

</bundles_post_ra>
